<compile_context>
chip_gen: v5e
topology: v5e:2x2
jax: 0.10.0
libtpu: 0.0.40
codegen_flags: <defaults>
</compile_context>

<pallas_src>
import jax
import jax.numpy as jnp
from jax import lax
from jax.experimental import pallas as pl
from jax.experimental.pallas import tpu as pltpu

EPS = 1e-8
LANE = 128
ROW_CHUNK = 256        # in-kernel sub-chunk: bounds vreg live ranges at large tiles
MAX_TILE = 4096        # tile cap: keeps double-buffered tiles well inside scoped VMEM


def _softplus(x):
    # matches torch.nn.Softplus(beta=1, threshold=20)
    return jnp.where(x > 20.0, x, jnp.log1p(jnp.exp(jnp.minimum(x, 20.0))))


def _round_up(v, m):
    return (v + m - 1) // m * m


def _select_tiling(batch, tile_b=None):
    """Pick (rows_per_tile, num_tiles).

    Small batches: one tile (no per-grid-step overhead).  Large batches: ~1K-row
    tiles with an EVEN tile count so dimension_semantics=("parallel",) shards the
    grid across both v7x TensorCores.  Tiles > 256 rows are multiples of ROW_CHUNK.
    """
    b8 = _round_up(batch, 8)

    def _align(tb):
        tb = max(8, min(tb, MAX_TILE))
        return _round_up(tb, ROW_CHUNK) if tb > ROW_CHUNK else _round_up(tb, 8)

    if tile_b is not None:
        tb = _align(min(tile_b, b8))
    elif b8 <= 2048:
        tb = _align(b8)                       # single tile
    else:
        n = -(-b8 // 1024)
        if n % 2:
            n += 1                            # even tile count for v7x megacore
        tb = _align(-(-b8 // n))
    n = -(-b8 // tb)
    if n > 1 and n % 2:
        n += 1                                # keep both v7x cores busy
    return tb, n


def _make_kernel(n_chunks, rc, d0, latent, p, out_w):
    """n_chunks * rc = rows per grid tile; d0: input width; latent: L;
    p: padded layer width; out_w: packed (lane-dense) output width."""
    pack_w = d0 + 3 * latent + 2              # xrec | mu | scale | z | bce | kl
    pad_w = out_w - pack_w

    def kernel(xn_ref, w_ref, b_ref, out_ref):
        def mm(a, k):
            # MXU operands follow the weight slab dtype (bf16 by default),
            # accumulation is f32; all elementwise math stays f32 (v5e friendly).
            w = w_ref[k]
            return jnp.dot(a.astype(w.dtype), w, preferred_element_type=jnp.float32)

        def process(r0):
            rows = pl.ds(r0, rc)
            xn = xn_ref[rows, :]                              # (rc, d0+L) f32
            noise = xn[:, d0:d0 + latent]                     # (rc, L)

            # ---------------- encoder ----------------
            # we1 slab rows d0..d0+L-1 are zero, so the noise lanes of the merged
            # input contribute nothing to the first matmul.
            h = jnp.maximum(mm(xn, 0) + b_ref[0:1, :], 0.0)   # Linear + ReLU
            h = jnp.maximum(mm(h, 1) + b_ref[1:2, :], 0.0)    # Linear + ReLU
            enc = mm(h, 2) + b_ref[2:3, :]                    # [mu | logvar | 0]
            mu = enc[:, :latent]
            logvar = enc[:, latent:2 * latent]
            scale = _softplus(logvar) + EPS

            # ---------------- reparameterize (rsample) ----------------
            z = mu + scale * noise                            # (rc, L)

            # ---------------- decoder ----------------
            zf = jnp.concatenate(
                [z, jnp.zeros((rc, p - latent), jnp.float32)], axis=-1)
            d = mm(zf, 3) + b_ref[3:4, :]                     # Linear (no activation)
            d = jnp.maximum(mm(d, 4) + b_ref[4:5, :], 0.0)    # Linear + ReLU
            xrec = (mm(d, 5) + b_ref[5:6, :])[:, :d0]         # Linear (no activation)

            # ---------------- per-row losses (f32) ----------------
            t = xn[:, :d0] + 0.5
            # torch's BCE clamps log() at -100; clamp the argument as well so any
            # drift of xrec outside (0,1) degrades gracefully instead of NaN-ing.
            logp = jnp.maximum(jnp.log(jnp.maximum(xrec, 0.0)), -100.0)
            log1mp = jnp.maximum(jnp.log1p(-jnp.minimum(xrec, 1.0)), -100.0)
            bce_row = jnp.sum(-(t * logp + (1.0 - t) * log1mp),
                              axis=-1, keepdims=True)         # (rc, 1)
            kl_row = 0.5 * jnp.sum(
                scale * scale + mu * mu - 1.0 - 2.0 * jnp.log(scale),
                axis=-1, keepdims=True)                       # (rc, 1)

            # ---- lane-dense packed output: [xrec | mu | scale | z | bce | kl | 0] ----
            pieces = [xrec, mu, scale, z, bce_row, kl_row]
            if pad_w:
                pieces.append(jnp.zeros((rc, pad_w), jnp.float32))
            out_ref[rows, :] = jnp.concatenate(pieces, axis=-1).astype(out_ref.dtype)

        if n_chunks == 1:
            process(0)
        else:
            # fori_loop (not a static Python for) bounds the live vreg working set
            # while keeping the big DMA tile.
            def body(c, carry):
                process(pl.multiple_of(c * rc, rc))
                return carry
            lax.fori_loop(0, n_chunks, body, 0)

    return kernel


def vae_forward(x, noise, params, *, tile_b=None, use_bf16_matmul=True,
                output_dtype=jnp.float32):
    """Fused VAE forward.  `noise` is the explicit N(0,1) sample used by rsample()."""
    B, D0 = x.shape
    L = noise.shape[-1]
    H1 = params["we1"].shape[1]
    H2 = params["we2"].shape[1]
    assert params["we3"].shape[1] == 2 * L

    IN_W = D0 + L                                       # merged [x | eps] input width
    P = _round_up(max(IN_W, H1, H2, 2 * L, D0), 8)      # common padded layer width
    OUT_W = _round_up(D0 + 3 * L + 2, LANE)             # lane-dense packed output width

    TB, num_tiles = _select_tiling(B, tile_b)
    B_pad = TB * num_tiles
    RC = min(TB, ROW_CHUNK)
    n_chunks = TB // RC

    # ---- pack all weights into one zero-padded (6,P,P) slab, biases into (8,P) ----
    def pad_w(w):
        return jnp.zeros((P, P), jnp.float32).at[: w.shape[0], : w.shape[1]].set(w)

    w_names = ("we1", "we2", "we3", "wd1", "wd2", "wd3")
    b_names = ("be1", "be2", "be3", "bd1", "bd2", "bd3")
    w_slab = jnp.stack([pad_w(params[n]) for n in w_names])          # (6, P, P)
    if use_bf16_matmul:
        w_slab = w_slab.astype(jnp.bfloat16)     # MXU operands only; biases stay f32
    b_slab = jnp.zeros((8, P), jnp.float32)
    for r, n in enumerate(b_names):
        b = params[n].reshape(-1)
        b_slab = b_slab.at[r, : b.shape[0]].set(b)

    # ---- merged input slab: x in lanes [0, D0), noise in lanes [D0, D0+L) ----
    xn = jnp.zeros((B_pad, IN_W), jnp.float32)
    xn = xn.at[:B, :D0].set(x).at[:B, D0:].set(noise)

    kernel = _make_kernel(n_chunks, RC, D0, L, P, OUT_W)

    out_itemsize = jnp.dtype(output_dtype).itemsize
    flops = 2 * B_pad * (D0 * H1 + H1 * H2 + H2 * 2 * L
                         + L * H2 + H2 * H1 + H1 * D0)
    transcendentals = B_pad * (2 * D0 + 4 * L)           # BCE logs + softplus + KL log
    bytes_accessed = int(xn.nbytes + w_slab.nbytes + b_slab.nbytes
                         + B_pad * OUT_W * out_itemsize)
    cost = pl.CostEstimate(flops=flops, transcendentals=transcendentals,
                           bytes_accessed=bytes_accessed)

    # double-buffered tiles + VMEM-resident slabs (+4 MiB slack); >= 16 MiB floor so
    # large tiles never trip v5e's small scoped-VMEM default.
    vmem_need = 2 * (TB * IN_W * 4 + TB * OUT_W * out_itemsize
                     + w_slab.nbytes + b_slab.nbytes)
    vmem_limit = int(max(vmem_need + (4 << 20), 16 << 20))

    out = pl.pallas_call(
        kernel,
        out_shape=jax.ShapeDtypeStruct((B_pad, OUT_W), output_dtype),
        grid=(num_tiles,),
        in_specs=[
            pl.BlockSpec((TB, IN_W), lambda i: (i, 0)),      # merged [x | eps] tile
            pl.BlockSpec((6, P, P), lambda i: (0, 0, 0)),    # weight slab (resident)
            pl.BlockSpec((8, P), lambda i: (0, 0)),          # bias slab (resident)
        ],
        out_specs=pl.BlockSpec((TB, OUT_W), lambda i: (i, 0)),
        compiler_params=pltpu.CompilerParams(
            dimension_semantics=("parallel",),
            vmem_limit_bytes=vmem_limit,
        ),
        cost_estimate=cost,
    )(xn, w_slab, b_slab)

    f32 = lambda a: a.astype(jnp.float32)
    xrec = out[:B, :D0]
    mu = out[:B, D0:D0 + L]
    scale = out[:B, D0 + L:D0 + 2 * L]
    z = out[:B, D0 + 2 * L:D0 + 3 * L]
    # trivial final combine on host (padded rows are simply never read)
    loss_recon = jnp.sum(f32(out[:B, D0 + 3 * L])) / B
    loss_kl = jnp.sum(f32(out[:B, D0 + 3 * L + 1])) / B
    return {
        "z_dist_mu": mu,
        "z_dist_scale": scale,
        "z_sample": z,
        "x_recon": xrec,
        "loss": loss_recon + loss_kl,
        "loss_recon": loss_recon,
        "loss_kl": loss_kl,
    }


def vae_reference(x, noise, params):
    """Pure-JAX f32 reference of the PyTorch forward (for tolerance checks)."""
    L = noise.shape[-1]
    h = jax.nn.relu(x @ params["we1"] + params["be1"])
    h = jax.nn.relu(h @ params["we2"] + params["be2"])
    enc = h @ params["we3"] + params["be3"]
    mu, logvar = enc[:, :L], enc[:, L:]
    scale = jax.nn.softplus(logvar) + EPS
    z = mu + scale * noise
    d = z @ params["wd1"] + params["bd1"]
    d = jax.nn.relu(d @ params["wd2"] + params["bd2"])
    xrec = d @ params["wd3"] + params["bd3"]
    t = x + 0.5
    logp = jnp.maximum(jnp.log(xrec), -100.0)
    log1mp = jnp.maximum(jnp.log1p(-xrec), -100.0)
    loss_recon = (-(t * logp + (1.0 - t) * log1mp)).sum(-1).mean()
    loss_kl = (0.5 * (scale * scale + mu * mu - 1.0
                      - 2.0 * jnp.log(scale)).sum(-1)).mean()
    return {"z_dist_mu": mu, "z_dist_scale": scale, "z_sample": z, "x_recon": xrec,
            "loss": loss_recon + loss_kl, "loss_recon": loss_recon, "loss_kl": loss_kl}


def init_params(key, sizes=(64, 32, 16, 8)):
    """Deterministic synthetic init (weights ~ U(-0.1, 0.1), biases 0).
    Final decoder bias is 0.5 so x_recon stays inside (0,1) for BCE with this init."""
    D0, H1, H2, L = sizes
    layer_shapes = [
        ("we1", (D0, H1)), ("we2", (H1, H2)), ("we3", (H2, 2 * L)),
        ("wd1", (L, H2)), ("wd2", (H2, H1)), ("wd3", (H1, D0)),
    ]
    params = {}
    for i, (name, shape) in enumerate(layer_shapes):
        k = jax.random.fold_in(key, i)
        params[name] = jax.random.uniform(k, shape, jnp.float32, -0.1, 0.1)
        params["b" + name[1:]] = jnp.zeros((1, shape[1]), jnp.float32)
    params["bd3"] = params["bd3"] + 0.5
    return params


if __name__ == "__main__":
    key = jax.random.PRNGKey(0)
    kx, kn, kp = jax.random.split(key, 3)

    B, D0, H1, H2, L = 64, 64, 32, 16, 8
    x = jax.random.uniform(kx, (B, D0), jnp.float32, -0.5, 0.5)   # x + 0.5 in [0, 1]
    noise = jax.random.normal(kn, (B, L), jnp.float32)            # rsample's eps
    params = init_params(kp, sizes=(D0, H1, H2, L))

    out = vae_forward(x, noise, params)        # auto-tiling -> single tile, grid=(1,)
    jax.block_until_ready(out)

    ref = vae_reference(x, noise, params)
    for name in ("x_recon", "z_dist_mu", "z_dist_scale", "z_sample",
                 "loss_recon", "loss_kl", "loss"):
        ok = bool(jnp.allclose(out[name], ref[name], rtol=1e-2, atol=1e-2))
        assert ok, f"mismatch vs reference in {name}"
    print("KERNEL_OK")
</pallas_src>

<mosaic_0001>
module attributes {stable_mosaic.version = 11 : i64} {
  func.func @kernel(%arg0: i32, %arg1: memref<64x72xf32, #tpu.memory_space<vmem>>, %arg2: memref<6x72x72xbf16, #tpu.memory_space<vmem>>, %arg3: memref<8x72xf32, #tpu.memory_space<vmem>>, %arg4: memref<64x128xf32, #tpu.memory_space<vmem>>) attributes {dimension_semantics = [#tpu.dimension_semantics<parallel>], iteration_bounds = array<i64: 1>, scalar_prefetch = 0 : i64, scratch_operands = 0 : i64, tpu.core_type = #tpu.core_type<tc>, window_params = [{transform_indices = @transform_0, window_bounds = array<i64: 64, 72>}, {pipeline_mode = #tpu.pipeline_mode<synchronous>, transform_indices = @transform_1, window_bounds = array<i64: 6, 72, 72>}, {pipeline_mode = #tpu.pipeline_mode<synchronous>, transform_indices = @transform_2, window_bounds = array<i64: 8, 72>}, {transform_indices = @transform_3, window_bounds = array<i64: 64, 128>}]} {
    %c0 = arith.constant 0 : index
    %c0_0 = arith.constant 0 : index
    %0 = vector.load %arg1[%c0, %c0_0] : memref<64x72xf32, #tpu.memory_space<vmem>>, vector<64x72xf32>
    %1 = vector.extract_strided_slice %0 {offsets = [0, 64], sizes = [64, 8], strides = [1, 1]} : vector<64x72xf32> to vector<64x8xf32>
    %c0_1 = arith.constant 0 : index
    %c0_2 = arith.constant 0 : index
    %c0_3 = arith.constant 0 : index
    %2 = vector.load %arg2[%c0_1, %c0_2, %c0_3] : memref<6x72x72xbf16, #tpu.memory_space<vmem>>, vector<1x72x72xbf16>
    %3 = vector.shape_cast %2 : vector<1x72x72xbf16> to vector<72x72xbf16>
    %4 = arith.truncf %0 : vector<64x72xf32> to vector<64x72xbf16>
    %cst = arith.constant dense<0.000000e+00> : vector<64x72xf32>
    %5 = tpu.matmul %4, %3, %cst {dimension_numbers = #tpu.dot_dimension_numbers<[1], [0], [0], [1], [0, 0, 1, 1], [], []>} : vector<64x72xbf16>, vector<72x72xbf16>, vector<64x72xf32> -> vector<64x72xf32>
    %c0_4 = arith.constant 0 : index
    %c0_5 = arith.constant 0 : index
    %6 = vector.load %arg3[%c0_4, %c0_5] : memref<8x72xf32, #tpu.memory_space<vmem>>, vector<1x72xf32>
    %7 = vector.broadcast %6 : vector<1x72xf32> to vector<64x72xf32>
    %8 = arith.addf %5, %7 : vector<64x72xf32>
    %cst_6 = arith.constant 0.000000e+00 : f32
    %9 = vector.broadcast %cst_6 : f32 to vector<64x72xf32>
    %10 = arith.maximumf %8, %9 : vector<64x72xf32>
    %c1 = arith.constant 1 : index
    %c0_7 = arith.constant 0 : index
    %c0_8 = arith.constant 0 : index
    %11 = vector.load %arg2[%c1, %c0_7, %c0_8] : memref<6x72x72xbf16, #tpu.memory_space<vmem>>, vector<1x72x72xbf16>
    %12 = vector.shape_cast %11 : vector<1x72x72xbf16> to vector<72x72xbf16>
    %13 = arith.truncf %10 : vector<64x72xf32> to vector<64x72xbf16>
    %cst_9 = arith.constant dense<0.000000e+00> : vector<64x72xf32>
    %14 = tpu.matmul %13, %12, %cst_9 {dimension_numbers = #tpu.dot_dimension_numbers<[1], [0], [0], [1], [0, 0, 1, 1], [], []>} : vector<64x72xbf16>, vector<72x72xbf16>, vector<64x72xf32> -> vector<64x72xf32>
    %c1_10 = arith.constant 1 : index
    %c0_11 = arith.constant 0 : index
    %15 = vector.load %arg3[%c1_10, %c0_11] : memref<8x72xf32, #tpu.memory_space<vmem>>, vector<1x72xf32>
    %16 = vector.broadcast %15 : vector<1x72xf32> to vector<64x72xf32>
    %17 = arith.addf %14, %16 : vector<64x72xf32>
    %cst_12 = arith.constant 0.000000e+00 : f32
    %18 = vector.broadcast %cst_12 : f32 to vector<64x72xf32>
    %19 = arith.maximumf %17, %18 : vector<64x72xf32>
    %c2 = arith.constant 2 : index
    %c0_13 = arith.constant 0 : index
    %c0_14 = arith.constant 0 : index
    %20 = vector.load %arg2[%c2, %c0_13, %c0_14] : memref<6x72x72xbf16, #tpu.memory_space<vmem>>, vector<1x72x72xbf16>
    %21 = vector.shape_cast %20 : vector<1x72x72xbf16> to vector<72x72xbf16>
    %22 = arith.truncf %19 : vector<64x72xf32> to vector<64x72xbf16>
    %cst_15 = arith.constant dense<0.000000e+00> : vector<64x72xf32>
    %23 = tpu.matmul %22, %21, %cst_15 {dimension_numbers = #tpu.dot_dimension_numbers<[1], [0], [0], [1], [0, 0, 1, 1], [], []>} : vector<64x72xbf16>, vector<72x72xbf16>, vector<64x72xf32> -> vector<64x72xf32>
    %c2_16 = arith.constant 2 : index
    %c0_17 = arith.constant 0 : index
    %24 = vector.load %arg3[%c2_16, %c0_17] : memref<8x72xf32, #tpu.memory_space<vmem>>, vector<1x72xf32>
    %25 = vector.broadcast %24 : vector<1x72xf32> to vector<64x72xf32>
    %26 = arith.addf %23, %25 : vector<64x72xf32>
    %27 = vector.extract_strided_slice %26 {offsets = [0, 0], sizes = [64, 8], strides = [1, 1]} : vector<64x72xf32> to vector<64x8xf32>
    %28 = vector.extract_strided_slice %26 {offsets = [0, 8], sizes = [64, 8], strides = [1, 1]} : vector<64x72xf32> to vector<64x8xf32>
    %cst_18 = arith.constant 2.000000e+01 : f32
    %29 = vector.broadcast %cst_18 : f32 to vector<64x8xf32>
    %30 = arith.cmpf ogt, %28, %29 : vector<64x8xf32>
    %cst_19 = arith.constant 2.000000e+01 : f32
    %31 = vector.broadcast %cst_19 : f32 to vector<64x8xf32>
    %32 = arith.minimumf %28, %31 : vector<64x8xf32>
    %33 = math.exp %32 : vector<64x8xf32>
    %34 = math.log1p %33 : vector<64x8xf32>
    %35 = arith.select %30, %28, %34 : vector<64x8xi1>, vector<64x8xf32>
    %cst_20 = arith.constant 9.99999993E-9 : f32
    %36 = vector.broadcast %cst_20 : f32 to vector<64x8xf32>
    %37 = arith.addf %35, %36 : vector<64x8xf32>
    %38 = arith.mulf %37, %1 : vector<64x8xf32>
    %39 = arith.addf %27, %38 : vector<64x8xf32>
    %cst_21 = arith.constant 0.000000e+00 : f32
    %40 = vector.broadcast %cst_21 : f32 to vector<64x64xf32>
    %41 = tpu.concatenate %39, %40 in 1 : vector<64x8xf32>, vector<64x64xf32> -> vector<64x72xf32>
    %c3 = arith.constant 3 : index
    %c0_22 = arith.constant 0 : index
    %c0_23 = arith.constant 0 : index
    %42 = vector.load %arg2[%c3, %c0_22, %c0_23] : memref<6x72x72xbf16, #tpu.memory_space<vmem>>, vector<1x72x72xbf16>
    %43 = vector.shape_cast %42 : vector<1x72x72xbf16> to vector<72x72xbf16>
    %44 = arith.truncf %41 : vector<64x72xf32> to vector<64x72xbf16>
    %cst_24 = arith.constant dense<0.000000e+00> : vector<64x72xf32>
    %45 = tpu.matmul %44, %43, %cst_24 {dimension_numbers = #tpu.dot_dimension_numbers<[1], [0], [0], [1], [0, 0, 1, 1], [], []>} : vector<64x72xbf16>, vector<72x72xbf16>, vector<64x72xf32> -> vector<64x72xf32>
    %c3_25 = arith.constant 3 : index
    %c0_26 = arith.constant 0 : index
    %46 = vector.load %arg3[%c3_25, %c0_26] : memref<8x72xf32, #tpu.memory_space<vmem>>, vector<1x72xf32>
    %47 = vector.broadcast %46 : vector<1x72xf32> to vector<64x72xf32>
    %48 = arith.addf %45, %47 : vector<64x72xf32>
    %c4 = arith.constant 4 : index
    %c0_27 = arith.constant 0 : index
    %c0_28 = arith.constant 0 : index
    %49 = vector.load %arg2[%c4, %c0_27, %c0_28] : memref<6x72x72xbf16, #tpu.memory_space<vmem>>, vector<1x72x72xbf16>
    %50 = vector.shape_cast %49 : vector<1x72x72xbf16> to vector<72x72xbf16>
    %51 = arith.truncf %48 : vector<64x72xf32> to vector<64x72xbf16>
    %cst_29 = arith.constant dense<0.000000e+00> : vector<64x72xf32>
    %52 = tpu.matmul %51, %50, %cst_29 {dimension_numbers = #tpu.dot_dimension_numbers<[1], [0], [0], [1], [0, 0, 1, 1], [], []>} : vector<64x72xbf16>, vector<72x72xbf16>, vector<64x72xf32> -> vector<64x72xf32>
    %c4_30 = arith.constant 4 : index
    %c0_31 = arith.constant 0 : index
    %53 = vector.load %arg3[%c4_30, %c0_31] : memref<8x72xf32, #tpu.memory_space<vmem>>, vector<1x72xf32>
    %54 = vector.broadcast %53 : vector<1x72xf32> to vector<64x72xf32>
    %55 = arith.addf %52, %54 : vector<64x72xf32>
    %cst_32 = arith.constant 0.000000e+00 : f32
    %56 = vector.broadcast %cst_32 : f32 to vector<64x72xf32>
    %57 = arith.maximumf %55, %56 : vector<64x72xf32>
    %c5 = arith.constant 5 : index
    %c0_33 = arith.constant 0 : index
    %c0_34 = arith.constant 0 : index
    %58 = vector.load %arg2[%c5, %c0_33, %c0_34] : memref<6x72x72xbf16, #tpu.memory_space<vmem>>, vector<1x72x72xbf16>
    %59 = vector.shape_cast %58 : vector<1x72x72xbf16> to vector<72x72xbf16>
    %60 = arith.truncf %57 : vector<64x72xf32> to vector<64x72xbf16>
    %cst_35 = arith.constant dense<0.000000e+00> : vector<64x72xf32>
    %61 = tpu.matmul %60, %59, %cst_35 {dimension_numbers = #tpu.dot_dimension_numbers<[1], [0], [0], [1], [0, 0, 1, 1], [], []>} : vector<64x72xbf16>, vector<72x72xbf16>, vector<64x72xf32> -> vector<64x72xf32>
    %c5_36 = arith.constant 5 : index
    %c0_37 = arith.constant 0 : index
    %62 = vector.load %arg3[%c5_36, %c0_37] : memref<8x72xf32, #tpu.memory_space<vmem>>, vector<1x72xf32>
    %63 = vector.broadcast %62 : vector<1x72xf32> to vector<64x72xf32>
    %64 = arith.addf %61, %63 : vector<64x72xf32>
    %65 = vector.extract_strided_slice %64 {offsets = [0, 0], sizes = [64, 64], strides = [1, 1]} : vector<64x72xf32> to vector<64x64xf32>
    %66 = vector.extract_strided_slice %0 {offsets = [0, 0], sizes = [64, 64], strides = [1, 1]} : vector<64x72xf32> to vector<64x64xf32>
    %cst_38 = arith.constant 5.000000e-01 : f32
    %67 = vector.broadcast %cst_38 : f32 to vector<64x64xf32>
    %68 = arith.addf %66, %67 : vector<64x64xf32>
    %cst_39 = arith.constant 0.000000e+00 : f32
    %69 = vector.broadcast %cst_39 : f32 to vector<64x64xf32>
    %70 = arith.maximumf %65, %69 : vector<64x64xf32>
    %71 = math.log %70 : vector<64x64xf32>
    %cst_40 = arith.constant -1.000000e+02 : f32
    %72 = vector.broadcast %cst_40 : f32 to vector<64x64xf32>
    %73 = arith.maximumf %71, %72 : vector<64x64xf32>
    %cst_41 = arith.constant 1.000000e+00 : f32
    %74 = vector.broadcast %cst_41 : f32 to vector<64x64xf32>
    %75 = arith.minimumf %65, %74 : vector<64x64xf32>
    %cst_42 = arith.constant 0.000000e+00 : f32
    %76 = vector.broadcast %cst_42 : f32 to vector<64x64xf32>
    %77 = arith.subf %76, %75 : vector<64x64xf32>
    %78 = math.log1p %77 : vector<64x64xf32>
    %cst_43 = arith.constant -1.000000e+02 : f32
    %79 = vector.broadcast %cst_43 : f32 to vector<64x64xf32>
    %80 = arith.maximumf %78, %79 : vector<64x64xf32>
    %81 = arith.mulf %68, %73 : vector<64x64xf32>
    %cst_44 = arith.constant 1.000000e+00 : f32
    %82 = vector.broadcast %cst_44 : f32 to vector<64x64xf32>
    %83 = arith.subf %82, %68 : vector<64x64xf32>
    %84 = arith.mulf %83, %80 : vector<64x64xf32>
    %85 = arith.addf %81, %84 : vector<64x64xf32>
    %cst_45 = arith.constant 0.000000e+00 : f32
    %86 = vector.broadcast %cst_45 : f32 to vector<64x64xf32>
    %87 = arith.subf %86, %85 : vector<64x64xf32>
    %cst_46 = arith.constant dense<0.000000e+00> : vector<64xf32>
    %88 = vector.multi_reduction <add>, %87, %cst_46 [1] : vector<64x64xf32> to vector<64xf32>
    %89 = vector.shape_cast %88 : vector<64xf32> to vector<64x1xf32>
    %90 = arith.mulf %37, %37 : vector<64x8xf32>
    %91 = arith.mulf %27, %27 : vector<64x8xf32>
    %92 = arith.addf %90, %91 : vector<64x8xf32>
    %cst_47 = arith.constant 1.000000e+00 : f32
    %93 = vector.broadcast %cst_47 : f32 to vector<64x8xf32>
    %94 = arith.subf %92, %93 : vector<64x8xf32>
    %95 = math.log %37 : vector<64x8xf32>
    %cst_48 = arith.constant 2.000000e+00 : f32
    %96 = vector.broadcast %cst_48 : f32 to vector<64x8xf32>
    %97 = arith.mulf %96, %95 : vector<64x8xf32>
    %98 = arith.subf %94, %97 : vector<64x8xf32>
    %cst_49 = arith.constant dense<0.000000e+00> : vector<64xf32>
    %99 = vector.multi_reduction <add>, %98, %cst_49 [1] : vector<64x8xf32> to vector<64xf32>
    %100 = vector.shape_cast %99 : vector<64xf32> to vector<64x1xf32>
    %cst_50 = arith.constant 5.000000e-01 : f32
    %101 = vector.broadcast %cst_50 : f32 to vector<64x1xf32>
    %102 = arith.mulf %101, %100 : vector<64x1xf32>
    %cst_51 = arith.constant 0.000000e+00 : f32
    %103 = vector.broadcast %cst_51 : f32 to vector<64x38xf32>
    %104 = tpu.concatenate %65, %27, %37, %39, %89, %102, %103 in 1 : vector<64x64xf32>, vector<64x8xf32>, vector<64x8xf32>, vector<64x8xf32>, vector<64x1xf32>, vector<64x1xf32>, vector<64x38xf32> -> vector<64x128xf32>
    %c0_52 = arith.constant 0 : index
    %c0_53 = arith.constant 0 : index
    %105 = vector.load %arg4[%c0_52, %c0_53] : memref<64x128xf32, #tpu.memory_space<vmem>>, vector<64x128xf32>
    tpu.vector_store %arg4[%c0_52, %c0_53], %104 {strides = array<i32>} : memref<64x128xf32, #tpu.memory_space<vmem>>, vector<64x128xf32>,
    return
  }
  func.func @transform_0(%arg0: i32) -> (i32, i32) {
    %c0_i32 = arith.constant 0 : i32
    %c0_i32_0 = arith.constant 0 : i32
    return %arg0, %c0_i32 : i32, i32
  }
  func.func @transform_1(%arg0: i32) -> (i32, i32, i32) {
    %c0_i32 = arith.constant 0 : i32
    %c0_i32_0 = arith.constant 0 : i32
    %c0_i32_1 = arith.constant 0 : i32
    %c0_i32_2 = arith.constant 0 : i32
    return %c0_i32, %c0_i32_0, %c0_i32_1 : i32, i32, i32
  }
  func.func @transform_2(%arg0: i32) -> (i32, i32) {
    %c0_i32 = arith.constant 0 : i32
    %c0_i32_0 = arith.constant 0 : i32
    %c0_i32_1 = arith.constant 0 : i32
    return %c0_i32, %c0_i32_0 : i32, i32
  }
  func.func @transform_3(%arg0: i32) -> (i32, i32) {
    %c0_i32 = arith.constant 0 : i32
    %c0_i32_0 = arith.constant 0 : i32
    return %arg0, %c0_i32 : i32, i32
  }
}

</mosaic_0001>

<bundles_post_ra>
// kernel: tpu_custom_call.1
= control target key start
LH: loop header
LB: loop body
LE: loop exit
PB: predicated region body
PF: predicated region fallthrough
CT: control target
= control target key end

     0   :  { %8 = vsyncpa [#allocation3], 0  ;;  %s2279_s0 = inlined_call_operand.hbm [shape: f32[64,72], index: 0, kind: input, shape index: {}]   ;;  %s2280_s1 = inlined_call_operand.hbm [shape: bf16[6,72,72], index: 1, kind: input, shape index: {}]   ;;  %s2281_s2 = inlined_call_operand.hbm [shape: f32[8,72], index: 2, kind: input, shape index: {}]   ;;  %s2282_s3 = inlined_call_operand.hbm [shape: f32[64,128], index: 3, kind: output, shape index: {}]  }
   0x1   :  { %9 = vsyncpa [#allocation6], 0  ;;  %s28_s14 = sshll.u32 %s2280_s1, 4  ;;  %s29_s14 = int_to_ptr.hbm [resolvable:$true] %s28_s14 }
   0x2   :  { %10 = vsyncpa [#allocation4], 0  ;;  %s1731_s15 = smov [#allocation5]   ;;  %s15_s19 = sshll.u32 %s2279_s0, 4  ;;  %s16_s19 = int_to_ptr.hbm [resolvable:$true] %s15_s19 }
   0x3   :  { %s30_s16 = sshll.u32 %s1731_s15, 4  ;;  %s1732_s20 = smov 64   ;;  %s31_s16 = int_to_ptr.vmem [resolvable:$true] %s30_s16 }
   0x4   :  { %s1733_s21 = smov 4   ;;  %s1734_s22 = smov [#allocation2]  }
   0x5   :  { %36 = dma.hbm_to_vmem [thread:$0]  %s29_s14, 3456, %s31_s16, [#allocation6], %s1732_s20, %s1732_s20, %s1733_s21  }
   0x6   :  { %s17_s23 = sshll.u32 %s1734_s22, 4  ;;  %s1735_s24 = smov 128   ;;  %s18_s23 = int_to_ptr.vmem [resolvable:$true] %s17_s23 }
   0x7   :  { %s1736_s1 = smov 8   ;;  %s42_s27 = sshll.u32 %s2281_s2, 4  ;;  %s43_s27 = int_to_ptr.hbm [resolvable:$true] %s42_s27 }
   0x8   :  { %23 = dma.hbm_to_vmem [thread:$0]  %s16_s19, 1024, %s18_s23, [#allocation3], %s1735_s24, %s1735_s24, %s1736_s1  }
   0x9   :  { %s1737_s0 = smov [#allocation7]  }
   0xa   :  { %s44_s28 = sshll.u32 %s1737_s0, 4  ;;  %s45_s28 = int_to_ptr.vmem [resolvable:$true] %s44_s28 }
   0xb   :  { %47 = dma.hbm_to_vmem [thread:$0]  %s43_s27, 128, %s45_s28, [#allocation6]  }
   0xc   :  { %1725 = dma.done.wait [#allocation3], 1024  }
   0xd   :  { %1726 = vsyncadd [#allocation3], 4294966272 }
   0xe   :  { %1727 = dma.done.wait [#allocation6], 3584  }
   0xf   :  { %1728 = vsyncadd [#allocation6], 4294963712  ;;  %v77_v0 = vld [vmem:[#allocation5 + $0x20] sm:$0xf]  ;;  %vm124_vm0 = vcmask 1043456   ;;  %v1493_v4 = vld [vmem:[#allocation5 + $0x18] sm:$0xff] }
  0x10   :  { %v101_v1 = vunpack.c.l.b16 %v77_v0  ;;  %v1492_v5 = vld [vmem:[#allocation5 + $0x10] sm:$0xff]  ;;  %v174_v6 = vld [vmem:[#allocation5 + $0x44] sm:$0xf]  ;;  %v1491_v9 = vld [vmem:[#allocation5 + $0x8] sm:$0xff]  ;;  %vm111_vm1 = vcmask 588800   ;;  %s1738_s2 = smov 72  }
  0x11   :  { %v198_v7 = vunpack.c.l.b16 %v174_v6  ;;  %v1490_v11 = vld [vmem:[#allocation5] sm:$0xff]  ;;  %v1780_v13 = vld [vmem:[#allocation2 + $0x8] sm:$0xff]  ;;  %v1792_v18 = vld [vmem:[#allocation2 + $0x10] sm:$0xff]  ;;  %s1739_s29 = smov 120   ;;  %s1740_s30 = smov 80  }
  0x12   :  { %v106_v2 = vpack.c.b16 %v101_v1, %v101_v1  ;;  %v1778_v12 = vld [vmem:[#allocation2] sm:$0xff]  ;;  %v1784_v15 = vld [vmem:[#allocation2 + $0x28] sm:$0xff]  ;;  %v1794_v19 = vld [vmem:[#allocation2 + $0x18] sm:$0xff]  ;;  %479 = vrot.lane.b32.xlu1 %v1792_v18, %s1738_s2  ;;  %s1741_s4 = smov [#allocation8]   ;;  %s1348_s8 = sshll.u32 %s2282_s3, 4  ;;  %s1349_s8 = int_to_ptr.hbm [resolvable:$true] %s1348_s8 }
  0x13   :  { %v203_v8 = vpack.c.b16 %v198_v7, %v198_v7  ;;  %v1782_v14 = vld [vmem:[#allocation2 + $0x20] sm:$0xff]  ;;  %v78_v16 = vpack.c.bf16 %v1780_v13, %v1778_v12  ;;  %v1796_v20 = vld [vmem:[#allocation2 + $0x30] sm:$0xff]  ;;  %v1798_v21 = vld [vmem:[#allocation2 + $0x38] sm:$0xff]  ;;  %v79_v22 = vpack.c.bf16 %v1794_v19, %v1792_v18  ;;  %475 = vrot.lane.b32.xlu0 %v1778_v12, %s1738_s2  ;;  %s1346_s5 = sshll.u32 %s1741_s4, 4  ;;  %s1347_s5 = int_to_ptr.vmem [resolvable:$true] %s1346_s5 }
  0x14   :  { %v126_v3 = vsel %vm124_vm0, %v106_v2, 0  ;;  %v80_v17 = vpack.c.bf16 %v1784_v15, %v1782_v14  ;;  %v81_v23 = vpack.c.bf16 %v1798_v21, %v1796_v20  ;;  %v1497_v24 = vld [vmem:[#allocation5 + $0x3c] sm:$0xff]  ;;  %v1496_v25 = vld [vmem:[#allocation5 + $0x34] sm:$0xff]  ;;  %v1495_v26 = vld [vmem:[#allocation5 + $0x2c] sm:$0xff]  ;;  %483 = vrot.lane.b32.xlu2 %v1782_v14, %s1738_s2 }
  0x15   :  { %131 = vmatpush.bf16.msra.mxu0 %v126_v3  ;;  %1514 = vmatpush.bf16.msra.mxu2 %v126_v3  ;;  %v221_v10 = vsel %vm124_vm0, %v203_v8, 0  ;;  %v1494_v27 = vld [vmem:[#allocation5 + $0x24] sm:$0xff]  ;;  %v1535_v29 = vld [vmem:[#allocation7] ss:$0 sm:$0xff]  ;;  %v1499_v63 = vld [vmem:[#allocation5 + $0x50] sm:$0xff] }
  0x16   :  { %226 = vmatpush.bf16.msra.mxu1 %v221_v10  ;;  %1519 = vmatpush.bf16.msra.mxu3 %v221_v10  ;;  %v269_v30 = vld [vmem:[#allocation5 + $0x68] sm:$0xf]  ;;  %v1501_v41 = vld [vmem:[#allocation5 + $0x60] sm:$0xff]  ;;  %v1500_v46 = vld [vmem:[#allocation5 + $0x58] sm:$0xff] }
  0x17   :  { %v293_v32 = vunpack.c.l.b16 %v269_v30  ;;  %v1498_v0 = vld [vmem:[#allocation5 + $0x48] sm:$0xff]  ;;  %v1536_v2 = vld [vmem:[#allocation7 + $0x1] ss:$0 sm:$0xff] }
  0x19   :  { %132 = vmatpush.bf16.msra.mxu0 %v1493_v4  ;;  %1515 = vmatpush.bf16.msra.mxu2 %v1493_v4  ;;  %v298_v35 = vpack.c.b16 %v293_v32, %v293_v32 }
  0x1a   :  { %227 = vmatpush.bf16.msra.mxu1 %v1497_v24  ;;  %1520 = vmatpush.bf16.msra.mxu3 %v1497_v24 }
  0x1b   :  { %v316_v37 = vsel %vm124_vm0, %v298_v35, 0  ;;  %477 = vrot.lane.b32.xlu0 %v1780_v13, %s1738_s2  ;;  %481 = vrot.lane.b32.xlu1 %v1794_v19, %s1738_s2 }
  0x1c   :  { %485 = vrot.lane.b32.xlu2 %v1784_v15, %s1738_s2 }
  0x1d   :  { %133 = vmatpush.bf16.msra.mxu0 %v1492_v5  ;;  %1516 = vmatpush.bf16.msra.mxu2 %v1492_v5 }
  0x1e   :  { %228 = vmatpush.bf16.msra.mxu1 %v1496_v25  ;;  %1521 = vmatpush.bf16.msra.mxu3 %v1496_v25 }
  0x21   :  { %134 = vmatpush.bf16.msra.mxu0 %v1491_v9  ;;  %1517 = vmatpush.bf16.msra.mxu2 %v1491_v9 }
  0x22   :  { %229 = vmatpush.bf16.msra.mxu1 %v1495_v26  ;;  %1522 = vmatpush.bf16.msra.mxu3 %v1495_v26 }
  0x24   :  { %487 = vrot.lane.b32.xlu2 %v1796_v20, %s1738_s2 }
  0x25   :  { %135 = vmatpush.bf16.msra.mxu0 %v1490_v11  ;;  %1518 = vmatpush.bf16.msra.mxu2 %v1490_v11 }
  0x26   :  { %230 = vmatpush.bf16.msra.mxu1 %v1494_v27  ;;  %1523 = vmatpush.bf16.msra.mxu3 %v1494_v27 }
  0x28   :  { %1378 = vmatmul.msk.bf16.vlgmr.msra.gmra.mxu0 %vm111_vm1, %v78_v16  ;;  %1380 = vmatmul.msk.bf16.vlgmr.msra.gmra.mxu2 %vm111_vm1, %v80_v17 }
  0x29   :  { %321 = vmatpush.bf16.msrb.mxu2 %v316_v37 }
  0x2d   :  { %322 = vmatpush.bf16.msrb.mxu2 %v1501_v41 }
  0x31   :  { %323 = vmatpush.bf16.msrb.mxu2 %v1500_v46 }
  0x35   :  { %324 = vmatpush.bf16.msrb.mxu2 %v1499_v63 }
  0x38   :  { %1379 = vmatmul.msk.bf16.gmra.mxu0 %vm111_vm1, %v79_v22  ;;  %1381 = vmatmul.msk.bf16.gmra.mxu2 %vm111_vm1, %v81_v23 }
  0x39   :  { %325 = vmatpush.bf16.msrb.mxu2 %v1498_v0 }
  0xa5   :  { %v137_v28 = vpop.f32.mrf.mxu0 }
  0xa6   :  { %v138_v33 = vadd.f32 %v1535_v29, %v137_v28 }
  0xa8   :  { %v157_v38 = vmax.f32 %v138_v33, 0.0 }
  0xab   :  { %v147_v31 = vpop.f32.mrf.mxu2 }
  0xac   :  { %v148_v40 = vadd.f32 %v1535_v29, %v147_v31  ;;  %v1829_v31 = vld [vmem:[#allocation7 + $0x2] ss:$0 sm:$0xff] }
  0xad   :  { %v139_v34 = vpop.f32.mrf.mxu0 }
  0xae   :  { %v140_v36 = vadd.f32 %v1535_v29, %v139_v34  ;;  %v161_v44 = vmax.f32 %v148_v40, 0.0 }
  0xb0   :  { %v158_v39 = vmax.f32 %v140_v36, 0.0 }
  0xb2   :  { %v175_v42 = vpack.c.bf16 %v158_v39, %v157_v38 }
  0xb3   :  { %v149_v43 = vpop.f32.mrf.mxu2 }
  0xb4   :  { %1398 = vmatmul.msk.bf16.vlgmr.msra.gmra.mxu1 %vm111_vm1, %v175_v42  ;;  %v150_v45 = vadd.f32 %v1535_v29, %v149_v43 }
  0xb5   :  { %v142_v47 = vpop.f32.mrf.mxu0 }
  0xb6   :  { %v162_v48 = vmax.f32 %v150_v45, 0.0  ;;  %v143_v50 = vadd.f32 %v1535_v29, %v142_v47 }
  0xb8   :  { %v177_v49 = vpack.c.bf16 %v162_v48, %v161_v44  ;;  %v159_v53 = vmax.f32 %v143_v50, 0.0 }
  0xba   :  { %1400 = vmatmul.msk.bf16.vlgmr.msra.gmra.mxu3 %vm111_vm1, %v177_v49 }
  0xbb   :  { %v152_v51 = vpop.f32.mrf.mxu2 }
  0xbc   :  { %v153_v56 = vadd.f32 %v1535_v29, %v152_v51 }
  0xbd   :  { %v144_v52 = vpop.f32.mrf.mxu0 }
  0xbe   :  { %v145_v54 = vadd.f32 %v1535_v29, %v144_v52  ;;  %v163_v59 = vmax.f32 %v153_v56, 0.0  ;;  %v476_v56 = vpop.permute.xlu0 %475 }
  0xc0   :  { %v160_v55 = vmax.f32 %v145_v54, 0.0 }
  0xc2   :  { %v176_v57 = vpack.c.bf16 %v160_v55, %v159_v53 }
  0xc3   :  { %v154_v58 = vpop.f32.mrf.mxu2 }
  0xc4   :  { %1399 = vmatmul.msk.bf16.gmra.mxu1 %vm111_vm1, %v176_v57  ;;  %v155_v60 = vadd.f32 %v1535_v29, %v154_v58 }
  0xc6   :  { %v164_v61 = vmax.f32 %v155_v60, 0.0 }
  0xc8   :  { %v178_v62 = vpack.c.bf16 %v164_v61, %v163_v59 }
  0xca   :  { %1401 = vmatmul.msk.bf16.gmra.mxu3 %vm111_vm1, %v178_v62 }
 0x131   :  { %v232_v1 = vpop.f32.mrf.mxu1 }
 0x132   :  { %v233_v3 = vadd.f32 %v1536_v2, %v232_v1 }
 0x134   :  { %v252_v6 = vmax.f32 %v233_v3, 0.0 }
 0x139   :  { %v234_v4 = vpop.f32.mrf.mxu1 }
 0x13a   :  { %v235_v5 = vadd.f32 %v1536_v2, %v234_v4 }
 0x13c   :  { %v253_v7 = vmax.f32 %v235_v5, 0.0 }
 0x13d   :  { %v242_v10 = vpop.f32.mrf.mxu3 }
 0x13e   :  { %v270_v8 = vpack.c.bf16 %v253_v7, %v252_v6  ;;  %v243_v18 = vadd.f32 %v1536_v2, %v242_v10 }
 0x140   :  { %1418 = vmatmul.msk.bf16.vlgmr.msrb.gmra.mxu2 %vm111_vm1, %v270_v8  ;;  %v256_v22 = vmax.f32 %v243_v18, 0.0 }
 0x141   :  { %v237_v9 = vpop.f32.mrf.mxu1 }
 0x142   :  { %v238_v11 = vadd.f32 %v1536_v2, %v237_v9 }
 0x144   :  { %v254_v13 = vmax.f32 %v238_v11, 0.0 }
 0x145   :  { %v244_v16 = vpop.f32.mrf.mxu3 }
 0x146   :  { %v245_v19 = vadd.f32 %v1536_v2, %v244_v16 }
 0x148   :  { %v257_v23 = vmax.f32 %v245_v19, 0.0 }
 0x149   :  { %v239_v12 = vpop.f32.mrf.mxu1 }
 0x14a   :  { %v240_v14 = vadd.f32 %v1536_v2, %v239_v12  ;;  %v272_v24 = vpack.c.bf16 %v257_v23, %v256_v22  ;;  %v478_v12 = vpop.permute.xlu0 %477 }
 0x14c   :  { %v255_v15 = vmax.f32 %v240_v14, 0.0 }
 0x14d   :  { %v247_v20 = vpop.f32.mrf.mxu3 }
 0x14e   :  { %v271_v17 = vpack.c.bf16 %v255_v15, %v254_v13  ;;  %v248_v26 = vadd.f32 %v1536_v2, %v247_v20 }
 0x150   :  { %1419 = vmatmul.msk.bf16.gmra.mxu2 %vm111_vm1, %v271_v17  ;;  %v258_v28 = vmax.f32 %v248_v26, 0.0 }
 0x155   :  { %v249_v25 = vpop.f32.mrf.mxu3 }
 0x156   :  { %v250_v27 = vadd.f32 %v1536_v2, %v249_v25 }
 0x158   :  { %v259_v29 = vmax.f32 %v250_v27, 0.0  ;;  %v480_v27 = vpop.permute.xlu1 %479 }
 0x15a   :  { %v273_v30 = vpack.c.bf16 %v259_v29, %v258_v28 }
 0x160   :  { %1420 = vmatmul.msk.bf16.gmra.mxu2 %vm111_vm1, %v272_v24 }
 0x170   :  { %1421 = vmatmul.msk.bf16.gmra.mxu2 %vm111_vm1, %v273_v30 }
 0x1c3   :  { %v327_v32 = vpop.f32.mrf.mxu2 }
 0x1c4   :  { %v1832_v33 = vadd.f32 %v1829_v31, %v327_v32 }
 0x1c6   :  { %v355_v34 = vmin.f32 %v1832_v33, 20.0  ;;  %vm347_vm3 = vcmp.gt.f32.partialorder %v1832_v33, 20.0 }
 0x1c8   :  { %v363_v35 = vmul.f32 1.442695, %v355_v34 }
 0x1ca   :  { %1541 = vpow2.f32 %v363_v35 }
 0x1cb   :  { %v329_v36 = vpop.f32.mrf.mxu2 }
 0x1cc   :  { %v1836_v37 = vadd.f32 %v1829_v31, %v329_v36 }
 0x1ce   :  { %v356_v38 = vmin.f32 %v1836_v37, 20.0  ;;  %vm348_vm5 = vcmp.gt.f32.partialorder %v1836_v37, 20.0 }
 0x1d0   :  { %v1542_v39 = vpop.eup %1541  ;;  %v365_v40 = vmul.f32 1.442695, %v356_v38 }
 0x1d1   :  { %v379_v41 = vadd.f32 1.0, %v1542_v39  ;;  %v382_v42 = vmul.f32 -0.5, %v1542_v39  ;;  %v385_v47 = vand.u32 2147483647, %v1542_v39 }
 0x1d2   :  { %1543 = vpow2.f32 %v365_v40 }
 0x1d3   :  { %v332_v43 = vpop.f32.mrf.mxu2  ;;  %1545 = vlog2.f32 %v379_v41  ;;  %v383_v46 = vadd.f32 1.0, %v382_v42  ;;  %vm386_vm2 = vcmp.lt.f32.partialorder %v385_v47, 0.0004427343 }
 0x1d4   :  { %v1840_v44 = vadd.f32 %v1829_v31, %v332_v43 }
 0x1d5   :  { %v384_v53 = vmul.f32 %v1542_v39, %v383_v46 }
 0x1d6   :  { %v357_v45 = vmin.f32 %v1840_v44, 20.0  ;;  %vm349_vm7 = vcmp.gt.f32.partialorder %v1840_v44, 20.0 }
 0x1d8   :  { %v1544_v48 = vpop.eup %1543  ;;  %v367_v49 = vmul.f32 1.442695, %v357_v45 }
 0x1d9   :  { %v1546_v50 = vpop.eup %1545  ;;  %v388_v51 = vadd.f32 1.0, %v1544_v48  ;;  %v391_v54 = vmul.f32 -0.5, %v1544_v48  ;;  %v394_v63 = vand.u32 2147483647, %v1544_v48 }
 0x1da   :  { %1547 = vpow2.f32 %v367_v49  ;;  %v381_v52 = vmul.f32 0.6931472, %v1546_v50  ;;  %v482_v50 = vpop.permute.xlu1 %481 }
 0x1db   :  { %v334_v55 = vpop.f32.mrf.mxu2  ;;  %1549 = vlog2.f32 %v388_v51  ;;  %v392_v62 = vadd.f32 1.0, %v391_v54  ;;  %vm395_vm4 = vcmp.lt.f32.partialorder %v394_v63, 0.0004427343 }
 0x1dc   :  { %v1844_v57 = vadd.f32 %v1829_v31, %v334_v55  ;;  %v387_v58 = vsel %vm386_vm2, %v384_v53, %v381_v52 }
 0x1dd   :  { %v451_v59 = vsel %vm347_vm3, %v1832_v33, %v387_v58  ;;  %v393_v7 = vmul.f32 %v1544_v48, %v392_v62  ;;  %v484_v62 = vpop.permute.xlu2 %483 }
 0x1de   :  { %v358_v60 = vmin.f32 %v1844_v57, 20.0  ;;  %v1849_v61 = vadd.f32 1e-08, %v451_v59  ;;  %vm350_vm9 = vcmp.gt.f32.partialorder %v1844_v57, 20.0 }
 0x1e0   :  { %v1548_v0 = vpop.eup %1547  ;;  %v369_v1 = vmul.f32 1.442695, %v358_v60  ;;  %v499_v2 = vmul.f32 %v476_v56, %v1849_v61 }
 0x1e1   :  { %v1550_v3 = vpop.eup %1549  ;;  %v397_v4 = vadd.f32 1.0, %v1548_v0  ;;  %v400_v5 = vmul.f32 -0.5, %v1548_v0  ;;  %v403_v14 = vand.u32 2147483647, %v1548_v0 }
 0x1e2   :  { %1551 = vpow2.f32 %v369_v1  ;;  %515 = vrot.lane.b32.xlu0 %v499_v2, %s1739_s29  ;;  %v390_v6 = vmul.f32 0.6931472, %v1550_v3 }
 0x1e3   :  { %v337_v8 = vpop.f32.mrf.mxu2  ;;  %1553 = vlog2.f32 %v397_v4  ;;  %v401_v11 = vadd.f32 1.0, %v400_v5  ;;  %vm404_vm6 = vcmp.lt.f32.partialorder %v403_v14, 0.0004427343 }
 0x1e4   :  { %v1854_v9 = vadd.f32 %v1829_v31, %v337_v8  ;;  %v396_v10 = vsel %vm395_vm4, %v393_v7, %v390_v6  ;;  %vm547_vm4 = vcmask 64512  }
 0x1e5   :  { %v452_v13 = vsel %vm348_vm5, %v1836_v37, %v396_v10  ;;  %v402_v20 = vmul.f32 %v1548_v0, %v401_v11 }
 0x1e6   :  { %v359_v15 = vmin.f32 %v1854_v9, 20.0  ;;  %v1859_v16 = vadd.f32 1e-08, %v452_v13  ;;  %vm351_vm11 = vcmp.gt.f32.partialorder %v1854_v9, 20.0 }
 0x1e8   :  { %v1552_v17 = vpop.eup %1551  ;;  %v371_v18 = vmul.f32 1.442695, %v359_v15  ;;  %v500_v19 = vmul.f32 %v478_v12, %v1859_v16  ;;  %v486_v15 = vpop.permute.xlu2 %485 }
 0x1e9   :  { %v1554_v22 = vpop.eup %1553  ;;  %v406_v23 = vadd.f32 1.0, %v1552_v17  ;;  %v409_v24 = vmul.f32 -0.5, %v1552_v17  ;;  %v412_v34 = vand.u32 2147483647, %v1552_v17 }
 0x1ea   :  { %1555 = vpow2.f32 %v371_v18  ;;  %517 = vrot.lane.b32.xlu1 %v500_v19, %s1739_s29  ;;  %489 = vrot.lane.b32.xlu0 %v1798_v21, %s1738_s2  ;;  %v399_v25 = vmul.f32 0.6931472, %v1554_v22 }
 0x1eb   :  { %v339_v26 = vpop.f32.mrf.mxu2  ;;  %1557 = vlog2.f32 %v406_v23  ;;  %v410_v30 = vadd.f32 1.0, %v409_v24  ;;  %vm413_vm8 = vcmp.lt.f32.partialorder %v412_v34, 0.0004427343 }
 0x1ec   :  { %v1867_v28 = vadd.f32 %v1829_v31, %v339_v26  ;;  %v405_v29 = vsel %vm404_vm6, %v402_v20, %v399_v25  ;;  %vm1001_vm6 = vcmask 523264  }
 0x1ed   :  { %v453_v32 = vsel %vm349_vm7, %v1840_v44, %v405_v29  ;;  %v411_v40 = vmul.f32 %v1552_v17, %v410_v30 }
 0x1ee   :  { %v360_v35 = vmin.f32 %v1867_v28, 20.0  ;;  %v1871_v36 = vadd.f32 1e-08, %v453_v32  ;;  %vm352_vm13 = vcmp.gt.f32.partialorder %v1867_v28, 20.0 }
 0x1f0   :  { %v1556_v38 = vpop.eup %1555  ;;  %v373_v21 = vmul.f32 1.442695, %v360_v35  ;;  %v501_v39 = vmul.f32 %v480_v27, %v1871_v36  ;;  %v488_v29 = vpop.permute.xlu2 %487  ;;  %v1036_v35 = vmul.f32 %v1840_v44, %v1840_v44 }
 0x1f1   :  { %v1558_v41 = vpop.eup %1557  ;;  %v415_v42 = vadd.f32 1.0, %v1556_v38  ;;  %v418_v43 = vmul.f32 -0.5, %v1556_v38  ;;  %v421_v52 = vand.u32 2147483647, %v1556_v38 }
 0x1f2   :  { %1559 = vpow2.f32 %v373_v21  ;;  %519 = vrot.lane.b32.xlu1 %v501_v39, %s1739_s29  ;;  %v408_v45 = vmul.f32 0.6931472, %v1558_v41  ;;  %v1039_v39 = vmul.f32 %v1867_v28, %v1867_v28  ;;  %v1034_v41 = vmul.f32 %v1832_v33, %v1832_v33 }
 0x1f3   :  { %v342_v46 = vpop.f32.mrf.mxu2  ;;  %1561 = vlog2.f32 %v415_v42  ;;  %v419_v49 = vadd.f32 1.0, %v418_v43  ;;  %vm422_vm10 = vcmp.lt.f32.partialorder %v421_v52, 0.0004427343  ;;  %v1038_v43 = vmul.f32 %v1854_v9, %v1854_v9 }
 0x1f4   :  { %v1877_v47 = vadd.f32 %v1829_v31, %v342_v46  ;;  %v414_v48 = vsel %vm413_vm8, %v411_v40, %v408_v45 }
 0x1f5   :  { %v454_v51 = vsel %vm350_vm9, %v1844_v57, %v414_v48  ;;  %v420_v59 = vmul.f32 %v1556_v38, %v419_v49  ;;  %v565_v48 = vld [vmem:[#allocation5 + $0x8c] sm:$0xf] }
 0x1f6   :  { %v361_v53 = vmin.f32 %v1877_v47, 20.0  ;;  %v1881_v54 = vadd.f32 1e-08, %v454_v51  ;;  %vm353_vm15 = vcmp.gt.f32.partialorder %v1877_v47, 20.0  ;;  %v589_v49 = vunpack.c.l.b16 %v565_v48 }
 0x1f8   :  { %v1560_v55 = vpop.eup %1559  ;;  %v375_v56 = vmul.f32 1.442695, %v361_v53  ;;  %v502_v58 = vmul.f32 %v482_v50, %v1881_v54  ;;  %v594_v50 = vpack.c.b16 %v589_v49, %v589_v49  ;;  %v1505_v53 = vld [vmem:[#allocation5 + $0x84] sm:$0xff] }
 0x1f9   :  { %v1562_v60 = vpop.eup %1561  ;;  %v424_v63 = vadd.f32 1.0, %v1560_v55  ;;  %v427_v0 = vmul.f32 -0.5, %v1560_v55  ;;  %v430_v5 = vand.u32 2147483647, %v1560_v55 }
 0x1fa   :  { %1563 = vpow2.f32 %v375_v56  ;;  %521 = vrot.lane.b32.xlu2 %v502_v58, %s1739_s29  ;;  %v417_v1 = vmul.f32 0.6931472, %v1562_v60  ;;  %v612_v52 = vsel %vm124_vm0, %v594_v50, 0 }
 0x1fb   :  { %1565 = vlog2.f32 %v424_v63  ;;  %v428_v3 = vadd.f32 1.0, %v427_v0  ;;  %vm431_vm12 = vcmp.lt.f32.partialorder %v430_v5, 0.0004427343  ;;  %v344_v38 = vpop.f32.mrf.mxu2  ;;  %617 = vmatpush.bf16.msrb.mxu3 %v612_v52  ;;  %v1503_v63 = vld [vmem:[#allocation5 + $0x74] sm:$0xff] }
 0x1fc   :  { %v423_v2 = vsel %vm422_vm10, %v420_v59, %v417_v1  ;;  %v1907_v21 = vadd.f32 %v1829_v31, %v344_v38  ;;  %v1504_v59 = vld [vmem:[#allocation5 + $0x7c] sm:$0xff] }
 0x1fd   :  { %v455_v4 = vsel %vm351_vm11, %v1854_v9, %v423_v2  ;;  %v429_v10 = vmul.f32 %v1560_v55, %v428_v3  ;;  %v1502_v2 = vld [vmem:[#allocation5 + $0x6c] sm:$0xff] }
 0x1fe   :  { %v1887_v6 = vadd.f32 1e-08, %v455_v4  ;;  %v362_v40 = vmin.f32 %v1907_v21, 20.0  ;;  %v1041_v45 = vmul.f32 %v1907_v21, %v1907_v21  ;;  %vm354_vm3 = vcmp.gt.f32.partialorder %v1907_v21, 20.0 }
 0x1ff   :  { %618 = vmatpush.bf16.msrb.mxu3 %v1505_v53 }
 0x200   :  { %v1564_v7 = vpop.eup %1563  ;;  %v503_v8 = vmul.f32 %v484_v62, %v1887_v6  ;;  %v377_v42 = vmul.f32 1.442695, %v362_v40 }
 0x201   :  { %v1566_v11 = vpop.eup %1565  ;;  %v433_v12 = vadd.f32 1.0, %v1564_v7  ;;  %v436_v13 = vmul.f32 -0.5, %v1564_v7  ;;  %v439_v20 = vand.u32 2147483647, %v1564_v7 }
 0x202   :  { %523 = vrot.lane.b32.xlu0 %v503_v8, %s1739_s29  ;;  %v426_v14 = vmul.f32 0.6931472, %v1566_v11 }
 0x203   :  { %1567 = vlog2.f32 %v433_v12  ;;  %v437_v18 = vadd.f32 1.0, %v436_v13  ;;  %vm440_vm14 = vcmp.lt.f32.partialorder %v439_v20, 0.0004427343  ;;  %619 = vmatpush.bf16.msrb.mxu3 %v1504_v59 }
 0x204   :  { %v432_v17 = vsel %vm431_vm12, %v429_v10, %v426_v14  ;;  %1569 = vpow2.f32 %v377_v42  ;;  %vm1298_vm12 = vcmask 654336  }
 0x205   :  { %v456_v19 = vsel %vm352_vm13, %v1867_v28, %v432_v17  ;;  %v438_v24 = vmul.f32 %v1564_v7, %v437_v18  ;;  %v1035_v17 = vmul.f32 %v1836_v37, %v1836_v37  ;;  %vm1307_vm13 = vcmask 719872  }
 0x206   :  { %v1893_v22 = vadd.f32 1e-08, %v456_v19 }
 0x207   :  { %620 = vmatpush.bf16.msrb.mxu3 %v1503_v63 }
 0x208   :  { %v504_v23 = vmul.f32 %v486_v15, %v1893_v22 }
 0x209   :  { %v1568_v25 = vpop.eup %1567 }
 0x20a   :  { %525 = vrot.lane.b32.xlu1 %v504_v23, %s1739_s29  ;;  %v435_v26 = vmul.f32 0.6931472, %v1568_v25  ;;  %v1570_v31 = vpop.eup %1569  ;;  %v1037_v25 = vmul.f32 %v1844_v57, %v1844_v57 }
 0x20b   :  { %v442_v46 = vadd.f32 1.0, %v1570_v31  ;;  %v445_v51 = vmul.f32 -0.5, %v1570_v31  ;;  %v448_v58 = vand.u32 2147483647, %v1570_v31  ;;  %621 = vmatpush.bf16.msrb.mxu3 %v1502_v2 }
 0x20c   :  { %v441_v27 = vsel %vm440_vm14, %v438_v24, %v435_v26 }
 0x20d   :  { %v457_v30 = vsel %vm353_vm15, %v1877_v47, %v441_v27  ;;  %1571 = vlog2.f32 %v442_v46  ;;  %v446_v55 = vadd.f32 1.0, %v445_v51  ;;  %vm449_vm2 = vcmp.lt.f32.partialorder %v448_v58, 0.0004427343 }
 0x20e   :  { %v1899_v32 = vadd.f32 1e-08, %v457_v30  ;;  %1573 = vlog2.f32 %v1849_v61  ;;  %v1031_v58 = vmul.f32 %v1893_v22, %v1893_v22  ;;  %vm1316_vm15 = vcmask 728064  }
 0x20f   :  { %v447_v62 = vmul.f32 %v1570_v31, %v446_v55  ;;  %1575 = vlog2.f32 %v1871_v36 }
 0x210   :  { %v505_v34 = vmul.f32 %v488_v29, %v1899_v32  ;;  %1577 = vlog2.f32 %v1893_v22 }
 0x211   :  { %1579 = vlog2.f32 %v1859_v16 }
 0x212   :  { %527 = vrot.lane.b32.xlu2 %v505_v34, %s1739_s29  ;;  %1054 = vrot.lane.b32.xlu1 %v1036_v35, %s1736_s1  ;;  %v1040_v35 = vmul.f32 %v1877_v47, %v1877_v47  ;;  %1581 = vlog2.f32 %v1881_v54 }
 0x213   :  { %v1572_v56 = vpop.eup %1571  ;;  %1583 = vlog2.f32 %v1887_v6 }
 0x214   :  { %v444_v60 = vmul.f32 0.6931472, %v1572_v56  ;;  %v1574_v26 = vpop.eup %1573  ;;  %1585 = vlog2.f32 %v1899_v32 }
 0x215   :  { %v1091_v29 = vmul.f32 0.6931472, %v1574_v26  ;;  %v1576_v48 = vpop.eup %1575 }
 0x216   :  { %v450_v0 = vsel %vm449_vm2, %v447_v62, %v444_v60  ;;  %v1095_v50 = vmul.f32 0.6931472, %v1576_v48  ;;  %vm1325_vm2 = vcmask 736256  }
 0x217   :  { %v458_v1 = vsel %vm354_vm3, %v1907_v21, %v450_v0 }
 0x218   :  { %v1937_v3 = vadd.f32 1e-08, %v458_v1  ;;  %v1108_v53 = vmul.f32 2.0, %v1095_v50 }
 0x21a   :  { %1060 = vrot.lane.b32.xlu1 %v1039_v39, %s1736_s1  ;;  %1050 = vrot.lane.b32.xlu2 %v1034_v41, %s1736_s1  ;;  %v1106_v39 = vmul.f32 2.0, %v1091_v29  ;;  %1587 = vlog2.f32 %v1937_v3 }
 0x222   :  { %1198 = vrot.lane.b32.xlu1 %v1840_v44, %s1732_s20  ;;  %1058 = vrot.lane.b32.xlu2 %v1038_v43, %s1736_s1 }
 0x22a   :  { %1206 = vrot.lane.b32.xlu1 %v1877_v47, %s1732_s20  ;;  %1064 = vrot.lane.b32.xlu2 %v1041_v45, %s1736_s1 }
 0x232   :  { %1228 = vrot.lane.b32.xlu1 %v1859_v16, %s1732_s20  ;;  %1196 = vrot.lane.b32.xlu2 %v1836_v37, %s1732_s20 }
 0x23a   :  { %1234 = vrot.lane.b32.xlu1 %v1887_v6, %s1732_s20  ;;  %1202 = vrot.lane.b32.xlu2 %v1854_v9, %s1732_s20 }
 0x242   :  { %1240 = vrot.lane.b32.xlu1 %v1937_v3, %s1732_s20  ;;  %1208 = vrot.lane.b32.xlu2 %v1907_v21, %s1732_s20 }
 0x24a   :  { %1230 = vrot.lane.b32.xlu2 %v1871_v36, %s1732_s20 }
 0x252   :  { %1236 = vrot.lane.b32.xlu2 %v1893_v22, %s1732_s20 }
 0x254   :  { %v516_v4 = vpop.permute.xlu0 %515  ;;  %v522_v15 = vpop.permute.xlu2 %521 }
 0x255   :  { %v1948_v5 = vadd.f32 %v516_v4, %v1832_v33  ;;  %v542_v20 = vadd.f32 %v522_v15, %v1844_v57  ;;  %v1508_v4 = vld [vmem:[#allocation5 + $0xa0] sm:$0xff] }
 0x257   :  { %v548_v12 = vsel %vm547_vm4, %v1948_v5, 0.0 }
 0x25c   :  { %v518_v7 = vpop.permute.xlu1 %517  ;;  %v490_v8 = vpop.permute.xlu0 %489 }
 0x25d   :  { %v1951_v10 = vadd.f32 %v518_v7, %v1836_v37  ;;  %v506_v11 = vmul.f32 %v490_v8, %v1937_v3  ;;  %v551_v37 = vsel %vm547_vm4, %v542_v20, 0.0  ;;  %v1507_v7 = vld [vmem:[#allocation5 + $0x98] sm:$0xff]  ;;  %v1506_v8 = vld [vmem:[#allocation5 + $0x90] sm:$0xff] }
 0x25f   :  { %v549_v13 = vsel %vm547_vm4, %v1951_v10, 0.0  ;;  %529 = vrot.lane.b32.xlu0 %v506_v11, %s1739_s29 }
 0x260   :  { %v566_v14 = vpack.c.bf16 %v549_v13, %v548_v12 }
 0x262   :  { %1438 = vmatmul.msk.bf16.vlgmr.msrb.gmra.mxu3 %vm111_vm1, %v566_v14 }
 0x264   :  { %v520_v18 = vpop.permute.xlu1 %519 }
 0x265   :  { %v1964_v19 = vadd.f32 %v520_v18, %v1840_v44  ;;  %v1026_v44 = vmul.f32 %v1849_v61, %v1849_v61 }
 0x267   :  { %1052 = vrot.lane.b32.xlu0 %v1035_v17, %s1736_s1  ;;  %v550_v24 = vsel %vm547_vm4, %v1964_v19, 0.0 }
 0x268   :  { %v567_v27 = vpack.c.bf16 %v551_v37, %v550_v24 }
 0x26c   :  { %v1968_v23 = vpop.permute.xlu2 %527 }
 0x26d   :  { %v2025_v11 = vadd.f32 %v1968_v23, %v1877_v47  ;;  %v1027_v47 = vmul.f32 %v1859_v16, %v1859_v16 }
 0x26f   :  { %1056 = vrot.lane.b32.xlu0 %v1037_v25, %s1736_s1  ;;  %v554_v15 = vsel %vm547_vm4, %v2025_v11, 0.0 }
 0x272   :  { %1439 = vmatmul.msk.bf16.gmra.mxu3 %vm111_vm1, %v567_v27 }
 0x274   :  { %v1051_v30 = vpop.permute.xlu2 %1050  ;;  %v524_v40 = vpop.permute.xlu0 %523 }
 0x275   :  { %v1074_v34 = vadd.f32 %v1051_v30, %v1026_v44  ;;  %v1984_v42 = vadd.f32 %v524_v40, %v1854_v9  ;;  %v1028_v9 = vmul.f32 %v1871_v36, %v1871_v36  ;;  %v1578_v36 = vpop.eup %1577 }
 0x276   :  { %v1101_v60 = vmul.f32 0.6931472, %v1578_v36  ;;  %v1580_v18 = vpop.eup %1579 }
 0x277   :  { %v1482_v38 = vadd.f32 -1.0, %v1074_v34  ;;  %1062 = vrot.lane.b32.xlu0 %v1040_v35, %s1736_s1  ;;  %v552_v45 = vsel %vm547_vm4, %v1984_v42, 0.0  ;;  %v1093_v23 = vmul.f32 0.6931472, %v1580_v18  ;;  %v1582_v44 = vpop.eup %1581  ;;  %v1029_v34 = vmul.f32 %v1881_v54, %v1881_v54 }
 0x278   :  { %v1111_v62 = vmul.f32 2.0, %v1101_v60  ;;  %v1097_v35 = vmul.f32 0.6931472, %v1582_v44 }
 0x279   :  { %v1114_v41 = vsub.f32 %v1482_v38, %v1106_v39  ;;  %v1107_v26 = vmul.f32 2.0, %v1093_v23  ;;  %v1030_v39 = vmul.f32 %v1887_v6, %v1887_v6  ;;  %v2056_v6 = vld [vmem:[#allocation7 + $0x3] ss:$0 sm:$0xff] }
 0x27a   :  { %v1109_v40 = vmul.f32 2.0, %v1097_v35 }
 0x27b   :  { %1130 = vrot.lane.b32.xlu1 %v1114_v41, %s1739_s29 }
 0x27c   :  { %v526_v43 = vpop.permute.xlu1 %525  ;;  %v1059_v24 = vpop.permute.xlu2 %1058 }
 0x27d   :  { %v1988_v31 = vadd.f32 %v526_v43, %v1867_v28  ;;  %v1584_v43 = vpop.eup %1583  ;;  %v1078_v48 = vadd.f32 %v1059_v24, %v1030_v39 }
 0x27f   :  { %v553_v46 = vsel %vm547_vm4, %v1988_v31, 0.0  ;;  %1194 = vrot.lane.b32.xlu0 %v1832_v33, %s1732_s20 }
 0x280   :  { %v568_v49 = vpack.c.bf16 %v553_v46, %v552_v45 }
 0x282   :  { %1440 = vmatmul.msk.bf16.gmra.mxu3 %vm111_vm1, %v568_v49 }
 0x284   :  { %v1055_v51 = vpop.permute.xlu1 %1054  ;;  %v1065_v30 = vpop.permute.xlu2 %1064 }
 0x285   :  { %v1076_v52 = vadd.f32 %v1055_v51, %v1028_v9  ;;  %v1099_v9 = vmul.f32 0.6931472, %v1584_v43 }
 0x287   :  { %v1484_v55 = vadd.f32 -1.0, %v1076_v52  ;;  %1200 = vrot.lane.b32.xlu0 %v1844_v57, %s1732_s20  ;;  %v1110_v52 = vmul.f32 2.0, %v1099_v9  ;;  %v1513_v9 = vld [vmem:[#allocation5 + $0xcc] sm:$0xff] }
 0x289   :  { %v1116_v56 = vsub.f32 %v1484_v55, %v1108_v53  ;;  %v1032_v53 = vmul.f32 %v1899_v32, %v1899_v32  ;;  %v1586_v55 = vpop.eup %1585 }
 0x28b   :  { %1134 = vrot.lane.b32.xlu2 %v1116_v56, %s1739_s29 }
 0x28c   :  { %v1061_v33 = vpop.permute.xlu1 %1060  ;;  %v2054_v50 = vpop.permute.xlu2 %1196 }
 0x28d   :  { %v1079_v59 = vadd.f32 %v1061_v33, %v1031_v58 }
 0x28f   :  { %1204 = vrot.lane.b32.xlu0 %v1867_v28, %s1732_s20  ;;  %v1487_v57 = vadd.f32 -1.0, %v1079_v59  ;;  %v652_v28 = vld [vmem:[#allocation5 + $0xb0] sm:$0xf] }
 0x290   :  { %v676_v22 = vunpack.c.l.b16 %v652_v28 }
 0x291   :  { %v1119_v63 = vsub.f32 %v1487_v57, %v1111_v62  ;;  %v1103_v57 = vmul.f32 0.6931472, %v1586_v55 }
 0x292   :  { %v681_v0 = vpack.c.b16 %v676_v22, %v676_v22 }
 0x293   :  { %1258 = vrot.lane.b32.xlu2 %v1948_v5, %s1740_s30  ;;  %v1112_v22 = vmul.f32 2.0, %v1103_v57 }
 0x294   :  { %v2017_v1 = vpop.permute.xlu1 %1198  ;;  %v699_v2 = vsel %vm124_vm0, %v681_v0, 0  ;;  %v2070_v28 = vpop.permute.xlu2 %1202 }
 0x295   :  { %704 = vmatpush.bf16.msrb.mxu0 %v699_v2  ;;  %v1588_v0 = vpop.eup %1587 }
 0x297   :  { %1226 = vrot.lane.b32.xlu0 %v1849_v61, %s1732_s20  ;;  %v1509_v61 = vld [vmem:[#allocation5 + $0xa8] sm:$0xff] }
 0x299   :  { %705 = vmatpush.bf16.msrb.mxu0 %v1509_v61 }
 0x29b   :  { %1140 = vrot.lane.b32.xlu2 %v1119_v63, %s1739_s29  ;;  %v1033_v63 = vmul.f32 %v1937_v3, %v1937_v3 }
 0x29c   :  { %v2020_v5 = vpop.permute.xlu1 %1206 }
 0x29d   :  { %706 = vmatpush.bf16.msrb.mxu0 %v1508_v4  ;;  %v1081_v2 = vadd.f32 %v1065_v30, %v1033_v63 }
 0x29f   :  { %1232 = vrot.lane.b32.xlu0 %v1881_v54, %s1732_s20  ;;  %v1486_v54 = vadd.f32 -1.0, %v1078_v48 }
 0x2a1   :  { %707 = vmatpush.bf16.msrb.mxu0 %v1507_v7  ;;  %v1118_v33 = vsub.f32 %v1486_v54, %v1110_v52  ;;  %v1105_v7 = vmul.f32 0.6931472, %v1588_v0 }
 0x2a3   :  { %1264 = vrot.lane.b32.xlu2 %v542_v20, %s1740_s30 }
 0x2a4   :  { %v2027_v12 = vpop.permute.xlu1 %1228 }
 0x2a5   :  { %708 = vmatpush.bf16.msrb.mxu0 %v1506_v8  ;;  %v1113_v8 = vmul.f32 2.0, %v1105_v7 }
 0x2a7   :  { %1238 = vrot.lane.b32.xlu0 %v1899_v32, %s1732_s20 }
 0x2ac   :  { %v2040_v37 = vpop.permute.xlu1 %1234 }
 0x2b4   :  { %v2048_v45 = vpop.permute.xlu1 %1240 }
 0x2d1   :  { %v530_v13 = vpop.permute.xlu0 %529 }
 0x2d2   :  { %v2030_v14 = vadd.f32 %v530_v13, %v1907_v21 }
 0x2d4   :  { %v555_v17 = vsel %vm547_vm4, %v2030_v14, 0.0 }
 0x2d5   :  { %v569_v20 = vpack.c.bf16 %v555_v17, %v554_v15  ;;  %v2075_v15 = vpop.permute.xlu2 %1208 }
 0x2d7   :  { %1441 = vmatmul.msk.bf16.gmra.mxu3 %vm111_vm1, %v569_v20 }
 0x2d9   :  { %v1053_v25 = vpop.permute.xlu0 %1052 }
 0x2da   :  { %v1075_v21 = vadd.f32 %v1053_v25, %v1027_v47 }
 0x2dc   :  { %v1483_v27 = vadd.f32 -1.0, %v1075_v21 }
 0x2dd   :  { %v2081_v47 = vpop.permute.xlu2 %1230 }
 0x2de   :  { %v1115_v29 = vsub.f32 %v1483_v27, %v1107_v26 }
 0x2e0   :  { %1132 = vrot.lane.b32.xlu0 %v1115_v29, %s1739_s29 }
 0x2e1   :  { %v1057_v38 = vpop.permute.xlu0 %1056 }
 0x2e2   :  { %v1077_v16 = vadd.f32 %v1057_v38, %v1029_v34 }
 0x2e4   :  { %v1485_v41 = vadd.f32 -1.0, %v1077_v16 }
 0x2e5   :  { %v623_v46 = vpop.f32.mrf.mxu3  ;;  %v2085_v26 = vpop.permute.xlu2 %1236 }
 0x2e6   :  { %v1117_v49 = vsub.f32 %v1485_v41, %v1109_v40  ;;  %v747_v41 = vld [vmem:[#allocation5 + $0xd4] sm:$0xf] }
 0x2e7   :  { %v771_v43 = vunpack.c.l.b16 %v747_v41 }
 0x2e8   :  { %1260 = vrot.lane.b32.xlu0 %v1951_v10, %s1740_s30  ;;  %1136 = vrot.lane.b32.xlu1 %v1117_v49, %s1739_s29  ;;  %v624_v10 = vadd.f32 %v2056_v6, %v623_v46 }
 0x2e9   :  { %v1063_v51 = vpop.permute.xlu0 %1062  ;;  %v776_v46 = vpack.c.b16 %v771_v43, %v771_v43 }
 0x2ea   :  { %v1080_v58 = vadd.f32 %v1063_v51, %v1032_v53  ;;  %v1512_v51 = vld [vmem:[#allocation5 + $0xc4] sm:$0xff]  ;;  %v1511_v53 = vld [vmem:[#allocation5 + $0xbc] sm:$0xff] }
 0x2eb   :  { %v794_v49 = vsel %vm124_vm0, %v776_v46, 0 }
 0x2ec   :  { %v1488_v62 = vadd.f32 -1.0, %v1080_v58  ;;  %799 = vmatpush.bf16.msrb.mxu1 %v794_v49 }
 0x2ed   :  { %v1131_v56 = vpop.permute.xlu1 %1130  ;;  %v625_v36 = vpop.f32.mrf.mxu3 }
 0x2ee   :  { %v1154_v59 = vsel %vm547_vm4, %v1131_v56, 0.0  ;;  %v626_v60 = vadd.f32 %v2056_v6, %v625_v36  ;;  %v1120_v61 = vsub.f32 %v1488_v62, %v1112_v22  ;;  %v1135_v44 = vpop.permute.xlu2 %1134 }
 0x2ef   :  { %1155 = vadd.xlane.f32.xlu2 %v1154_v59  ;;  %v1160_v34 = vsel %vm547_vm4, %v1135_v44, 0.0 }
 0x2f0   :  { %1138 = vrot.lane.b32.xlu0 %v1118_v33, %s1739_s29  ;;  %1262 = vrot.lane.b32.xlu1 %v1964_v19, %s1740_s30  ;;  %v653_v32 = vpack.c.bf16 %v626_v60, %v624_v10  ;;  %v1489_v19 = vadd.f32 -1.0, %v1081_v2  ;;  %v1510_v33 = vld [vmem:[#allocation5 + $0xb4] sm:$0xff] }
 0x2f1   :  { %v2088_v27 = vpop.permute.xlu0 %1194  ;;  %800 = vmatpush.bf16.msrb.mxu1 %v1513_v9 }
 0x2f2   :  { %1458 = vmatmul.msk.bf16.vlgmr.msrb.gmra.mxu0 %vm111_vm1, %v653_v32  ;;  %v1121_v13 = vsub.f32 %v1489_v19, %v1113_v8 }
 0x2f5   :  { %v628_v4 = vpop.f32.mrf.mxu3  ;;  %801 = vmatpush.bf16.msrb.mxu1 %v1512_v51 }
 0x2f6   :  { %v629_v3 = vadd.f32 %v2056_v6, %v628_v4  ;;  %v2092_v30 = vpop.permute.xlu2 %1258  ;;  %v1539_v4 = vld [vmem:[#allocation7 + $0x4] ss:$0 sm:$0xff] }
 0x2f8   :  { %1266 = vrot.lane.b32.xlu0 %v1984_v42, %s1740_s30  ;;  %1142 = vrot.lane.b32.xlu1 %v1120_v61, %s1739_s29 }
 0x2f9   :  { %v2090_v29 = vpop.permute.xlu0 %1200  ;;  %802 = vmatpush.bf16.msrb.mxu1 %v1511_v53 }
 0x2fd   :  { %v630_v17 = vpop.f32.mrf.mxu3  ;;  %803 = vmatpush.bf16.msrb.mxu1 %v1510_v33  ;;  %v2123_v33 = vld [vmem:[#allocation7 + $0x5] ss:$0 sm:$0xff] }
 0x2fe   :  { %v631_v18 = vadd.f32 %v2056_v6, %v630_v17  ;;  %v1141_v38 = vpop.permute.xlu2 %1140 }
 0x2ff   :  { %v1169_v16 = vsel %vm547_vm4, %v1141_v38, 0.0 }
 0x300   :  { %1144 = vrot.lane.b32.xlu0 %v1121_v13, %s1739_s29  ;;  %v654_v20 = vpack.c.bf16 %v631_v18, %v629_v3 }
 0x301   :  { %v2095_v35 = vpop.permute.xlu0 %1204 }
 0x302   :  { %1459 = vmatmul.msk.bf16.gmra.mxu0 %vm111_vm1, %v654_v20 }
 0x305   :  { %v633_v24 = vpop.f32.mrf.mxu3 }
 0x306   :  { %v634_v23 = vadd.f32 %v2056_v6, %v633_v24 }
 0x309   :  { %v2098_v39 = vpop.permute.xlu0 %1226 }
 0x30d   :  { %v635_v42 = vpop.f32.mrf.mxu3 }
 0x30e   :  { %v636_v25 = vadd.f32 %v2056_v6, %v635_v42 }
 0x310   :  { %v655_v21 = vpack.c.bf16 %v636_v25, %v634_v23 }
 0x311   :  { %v2100_v40 = vpop.permute.xlu0 %1232 }
 0x312   :  { %1460 = vmatmul.msk.bf16.gmra.mxu0 %vm111_vm1, %v655_v21 }
 0x319   :  { %v2102_v48 = vpop.permute.xlu0 %1238 }
 0x32a   :  { %1161 = vadd.xlane.f32.xlu0 %v1160_v34 }
 0x332   :  { %1170 = vadd.xlane.f32.xlu0 %v1169_v16 }
 0x352   :  { %v1133_v54 = vpop.permute.xlu0 %1132 }
 0x353   :  { %v1157_v52 = vsel %vm547_vm4, %v1133_v54, 0.0 }
 0x354   :  { %1158 = vadd.xlane.f32.xlu1 %v1157_v52 }
 0x35a   :  { %v638_v55 = vpop.f32.mrf.mxu3  ;;  %v1137_v56 = vpop.permute.xlu1 %1136 }
 0x35b   :  { %v2106_v58 = vpop.permute.xlu0 %1260  ;;  %v1163_v36 = vsel %vm547_vm4, %v1137_v56, 0.0  ;;  %v639_v10 = vadd.f32 %v2056_v6, %v638_v55 }
 0x35c   :  { %1164 = vadd.xlane.f32.xlu2 %v1163_v36 }
 0x362   :  { %v640_v59 = vpop.f32.mrf.mxu3  ;;  %v2111_v57 = vpop.permute.xlu1 %1262 }
 0x363   :  { %v641_v60 = vadd.f32 %v2056_v6, %v640_v59  ;;  %v1139_v32 = vpop.permute.xlu0 %1138 }
 0x364   :  { %v1166_v62 = vsel %vm547_vm4, %v1139_v32, 0.0 }
 0x365   :  { %v656_v63 = vpack.c.bf16 %v641_v60, %v639_v10  ;;  %1167 = vadd.xlane.f32.xlu1 %v1166_v62 }
 0x367   :  { %1461 = vmatmul.msk.bf16.gmra.mxu0 %vm111_vm1, %v656_v63 }
 0x36a   :  { %v1143_v22 = vpop.permute.xlu1 %1142 }
 0x36b   :  { %v2115_v0 = vpop.permute.xlu0 %1266  ;;  %v1172_v2 = vsel %vm547_vm4, %v1143_v22, 0.0 }
 0x36c   :  { %1173 = vadd.xlane.f32.xlu2 %v1172_v2 }
 0x36f   :  { %v710_v61 = vpop.f32.mrf.mxu0 }
 0x370   :  { %v711_v19 = vadd.f32 %v1539_v4, %v710_v61 }
 0x372   :  { %v730_v17 = vmax.f32 %v711_v19, 0.0 }
 0x373   :  { %v1145_v7 = vpop.permute.xlu0 %1144 }
 0x374   :  { %v1175_v6 = vsel %vm547_vm4, %v1145_v7, 0.0 }
 0x375   :  { %1176 = vadd.xlane.f32.xlu1 %v1175_v6 }
 0x377   :  { %v712_v8 = vpop.f32.mrf.mxu0 }
 0x378   :  { %v713_v13 = vadd.f32 %v1539_v4, %v712_v8 }
 0x37a   :  { %v731_v3 = vmax.f32 %v713_v13, 0.0 }
 0x37c   :  { %v748_v18 = vpack.c.bf16 %v731_v3, %v730_v17  ;;  %v1621_v17 = vld [vmem:[#allocation2] sm:$0xff] }
 0x37d   :  { %v825_v3 = vadd.f32 0.5, %v1621_v17 }
 0x37e   :  { %1478 = vmatmul.msk.bf16.vlgmr.msrb.gmra.mxu1 %vm111_vm1, %v748_v18 }
 0x37f   :  { %v715_v20 = vpop.f32.mrf.mxu0 }
 0x380   :  { %v716_v24 = vadd.f32 %v1539_v4, %v715_v20 }
 0x382   :  { %v732_v25 = vmax.f32 %v716_v24, 0.0 }
 0x387   :  { %v717_v42 = vpop.f32.mrf.mxu0 }
 0x388   :  { %v718_v23 = vadd.f32 %v1539_v4, %v717_v42 }
 0x38a   :  { %v733_v21 = vmax.f32 %v718_v23, 0.0 }
 0x38c   :  { %v749_v44 = vpack.c.bf16 %v733_v21, %v732_v25  ;;  %v969_v21 = vsub.f32 1.0, %v825_v3 }
 0x38e   :  { %1479 = vmatmul.msk.bf16.gmra.mxu1 %vm111_vm1, %v749_v44 }
 0x38f   :  { %v720_v34 = vpop.f32.mrf.mxu0 }
 0x390   :  { %v721_v38 = vadd.f32 %v1539_v4, %v720_v34 }
 0x392   :  { %v734_v43 = vmax.f32 %v721_v38, 0.0 }
 0x397   :  { %v722_v16 = vpop.f32.mrf.mxu0 }
 0x398   :  { %v723_v41 = vadd.f32 %v1539_v4, %v722_v16 }
 0x39a   :  { %v735_v46 = vmax.f32 %v723_v41, 0.0 }
 0x39c   :  { %v750_v49 = vpack.c.bf16 %v735_v46, %v734_v43 }
 0x39e   :  { %1480 = vmatmul.msk.bf16.gmra.mxu1 %vm111_vm1, %v750_v49 }
 0x3e4   :  { %v725_v9 = vpop.f32.mrf.mxu0 }
 0x3e5   :  { %v726_v54 = vadd.f32 %v1539_v4, %v725_v9 }
 0x3e7   :  { %v736_v53 = vmax.f32 %v726_v54, 0.0 }
 0x3ec   :  { %v727_v51 = vpop.f32.mrf.mxu0 }
 0x3ed   :  { %v728_v52 = vadd.f32 %v1539_v4, %v727_v51 }
 0x3ef   :  { %v737_v55 = vmax.f32 %v728_v52, 0.0 }
 0x3f1   :  { %v751_v56 = vpack.c.bf16 %v737_v55, %v736_v53 }
 0x3f3   :  { %1481 = vmatmul.msk.bf16.gmra.mxu1 %vm111_vm1, %v751_v56 }
 0x3fb   :  { %v805_v36 = vpop.f32.mrf.mxu1 }
 0x3fc   :  { %v2126_v59 = vadd.f32 %v2123_v33, %v805_v36 }
 0x3fe   :  { %v833_v10 = vmax.f32 %v2126_v59, 0.0  ;;  %v865_v60 = vmin.f32 %v2126_v59, 1.0 }
 0x400   :  { %1589 = vlog2.f32 %v833_v10  ;;  %v873_v32 = vsub.f32 0.0, %v865_v60 }
 0x402   :  { %v881_v62 = vadd.f32 1.0, %v873_v32  ;;  %v884_v63 = vmul.f32 -0.5, %v873_v32  ;;  %v887_v13 = vand.u32 2147483647, %v873_v32 }
 0x403   :  { %v807_v22 = vpop.f32.mrf.mxu1 }
 0x404   :  { %v2131_v2 = vadd.f32 %v2123_v33, %v807_v22  ;;  %1591 = vlog2.f32 %v881_v62  ;;  %v885_v6 = vadd.f32 1.0, %v884_v63  ;;  %vm888_vm0 = vcmp.lt.f32.partialorder %v887_v13, 0.0004427343 }
 0x406   :  { %v1590_v61 = vpop.eup %1589  ;;  %v834_v4 = vmax.f32 %v2131_v2, 0.0  ;;  %v866_v7 = vmin.f32 %v2131_v2, 1.0  ;;  %v886_v25 = vmul.f32 %v885_v6, %v873_v32  ;;  %v1622_v32 = vld [vmem:[#allocation2 + $0x8] sm:$0xff] }
 0x407   :  { %v842_v19 = vmul.f32 0.6931472, %v1590_v61  ;;  %v826_v62 = vadd.f32 0.5, %v1622_v32 }
 0x408   :  { %1593 = vlog2.f32 %v834_v4  ;;  %v874_v8 = vsub.f32 0.0, %v866_v7 }
 0x409   :  { %v857_v34 = vmax.f32 %v842_v19, -100.0  ;;  %v970_v19 = vsub.f32 1.0, %v826_v62 }
 0x40a   :  { %v1592_v18 = vpop.eup %1591  ;;  %v890_v20 = vadd.f32 1.0, %v874_v8  ;;  %v893_v24 = vmul.f32 -0.5, %v874_v8  ;;  %v896_v9 = vand.u32 2147483647, %v874_v8 }
 0x40b   :  { %v810_v42 = vpop.f32.mrf.mxu1  ;;  %v883_v23 = vmul.f32 0.6931472, %v1592_v18  ;;  %v961_v51 = vmul.f32 %v857_v34, %v825_v3 }
 0x40c   :  { %v2136_v44 = vadd.f32 %v2123_v33, %v810_v42  ;;  %1595 = vlog2.f32 %v890_v20  ;;  %v894_v49 = vadd.f32 1.0, %v893_v24  ;;  %vm897_vm5 = vcmp.lt.f32.partialorder %v896_v9, 0.0004427343 }
 0x40d   :  { %v889_v38 = vsel %vm888_vm0, %v886_v25, %v883_v23 }
 0x40e   :  { %v1594_v16 = vpop.eup %1593  ;;  %v835_v41 = vmax.f32 %v2136_v44, 0.0  ;;  %v867_v43 = vmin.f32 %v2136_v44, 1.0  ;;  %v953_v46 = vmax.f32 %v889_v38, -100.0  ;;  %v895_v22 = vmul.f32 %v894_v49, %v874_v8  ;;  %v1623_v8 = vld [vmem:[#allocation2 + $0x10] sm:$0xff] }
 0x40f   :  { %v844_v53 = vmul.f32 0.6931472, %v1594_v16  ;;  %v827_v24 = vadd.f32 0.5, %v1623_v8  ;;  %v1624_v8 = vld [vmem:[#allocation2 + $0x18] sm:$0xff] }
 0x410   :  { %1597 = vlog2.f32 %v835_v41  ;;  %v875_v54 = vsub.f32 0.0, %v867_v43  ;;  %v977_v52 = vmul.f32 %v969_v21, %v953_v46 }
 0x411   :  { %v858_v7 = vmax.f32 %v844_v53, -100.0  ;;  %v971_v43 = vsub.f32 1.0, %v827_v24 }
 0x412   :  { %v1596_v55 = vpop.eup %1595  ;;  %v899_v56 = vadd.f32 1.0, %v875_v54  ;;  %v985_v36 = vadd.f32 %v977_v52, %v961_v51  ;;  %v902_v10 = vmul.f32 -0.5, %v875_v54  ;;  %v905_v21 = vand.u32 2147483647, %v875_v54 }
 0x413   :  { %v812_v60 = vpop.f32.mrf.mxu1  ;;  %v892_v63 = vmul.f32 0.6931472, %v1596_v55  ;;  %v962_v34 = vmul.f32 %v858_v7, %v826_v62 }
 0x414   :  { %v2141_v61 = vadd.f32 %v2123_v33, %v812_v60  ;;  %v993_v4 = vsub.f32 0.0, %v985_v36  ;;  %1599 = vlog2.f32 %v899_v56  ;;  %v903_v42 = vadd.f32 1.0, %v902_v10 }
 0x415   :  { %v898_v6 = vsel %vm897_vm5, %v895_v22, %v892_v63  ;;  %vm906_vm7 = vcmp.lt.f32.partialorder %v905_v21, 0.0004427343 }
 0x416   :  { %v1598_v13 = vpop.eup %1597  ;;  %v836_v17 = vmax.f32 %v2141_v61, 0.0  ;;  %v868_v3 = vmin.f32 %v2141_v61, 1.0  ;;  %v1002_v18 = vsel %vm1001_vm6, %v993_v4, 0.0  ;;  %v954_v20 = vmax.f32 %v898_v6, -100.0 }
 0x417   :  { %1003 = vadd.xlane.f32.xlu1 %v1002_v18  ;;  %v846_v23 = vmul.f32 0.6931472, %v1598_v13  ;;  %v904_v52 = vmul.f32 %v903_v42, %v875_v54  ;;  %v828_v42 = vadd.f32 0.5, %v1624_v8 }
 0x418   :  { %1601 = vlog2.f32 %v836_v17  ;;  %v876_v25 = vsub.f32 0.0, %v868_v3  ;;  %v978_v38 = vmul.f32 %v970_v19, %v954_v20 }
 0x419   :  { %v859_v55 = vmax.f32 %v846_v23, -100.0 }
 0x41a   :  { %v1600_v16 = vpop.eup %1599  ;;  %v908_v41 = vadd.f32 1.0, %v876_v25  ;;  %v911_v46 = vmul.f32 -0.5, %v876_v25  ;;  %v986_v9 = vadd.f32 %v978_v38, %v962_v34  ;;  %v914_v4 = vand.u32 2147483647, %v876_v25 }
 0x41b   :  { %v815_v49 = vpop.f32.mrf.mxu1  ;;  %v901_v51 = vmul.f32 0.6931472, %v1600_v16  ;;  %v963_v7 = vmul.f32 %v859_v55, %v827_v24  ;;  %v972_v24 = vsub.f32 1.0, %v828_v42 }
 0x41c   :  { %v2147_v53 = vadd.f32 %v2123_v33, %v815_v49  ;;  %1603 = vlog2.f32 %v908_v41  ;;  %v994_v56 = vsub.f32 0.0, %v986_v9  ;;  %v912_v22 = vadd.f32 1.0, %v911_v46 }
 0x41d   :  { %v907_v36 = vsel %vm906_vm7, %v904_v52, %v901_v51  ;;  %vm915_vm8 = vcmp.lt.f32.partialorder %v914_v4, 0.0004427343 }
 0x41e   :  { %v1602_v10 = vpop.eup %1601  ;;  %v837_v60 = vmax.f32 %v2147_v53, 0.0  ;;  %v869_v32 = vmin.f32 %v2147_v53, 1.0  ;;  %v955_v62 = vmax.f32 %v907_v36, -100.0  ;;  %v1005_v63 = vsel %vm1001_vm6, %v994_v56, 0.0 }
 0x41f   :  { %1006 = vadd.xlane.f32.xlu2 %v1005_v63  ;;  %v848_v19 = vmul.f32 0.6931472, %v1602_v10  ;;  %v913_v21 = vmul.f32 %v912_v22, %v876_v25 }
 0x420   :  { %1605 = vlog2.f32 %v837_v60  ;;  %v877_v54 = vsub.f32 0.0, %v869_v32  ;;  %v979_v6 = vmul.f32 %v971_v43, %v955_v62  ;;  %v1625_v62 = vld [vmem:[#allocation2 + $0x20] sm:$0xff] }
 0x421   :  { %v860_v16 = vmax.f32 %v848_v19, -100.0  ;;  %v829_v63 = vadd.f32 0.5, %v1625_v62 }
 0x422   :  { %v1604_v13 = vpop.eup %1603  ;;  %v917_v17 = vadd.f32 1.0, %v877_v54  ;;  %v987_v3 = vadd.f32 %v979_v6, %v963_v7  ;;  %v920_v18 = vmul.f32 -0.5, %v877_v54  ;;  %v923_v56 = vand.u32 2147483647, %v877_v54 }
 0x423   :  { %v817_v20 = vpop.f32.mrf.mxu1  ;;  %v910_v23 = vmul.f32 0.6931472, %v1604_v13  ;;  %v964_v36 = vmul.f32 %v860_v16, %v828_v42  ;;  %v973_v13 = vsub.f32 1.0, %v829_v63 }
 0x424   :  { %v2153_v34 = vadd.f32 %v2123_v33, %v817_v20  ;;  %v995_v38 = vsub.f32 0.0, %v987_v3  ;;  %1607 = vlog2.f32 %v917_v17  ;;  %v921_v52 = vadd.f32 1.0, %v920_v18 }
 0x425   :  { %v916_v41 = vsel %vm915_vm8, %v913_v21, %v910_v23  ;;  %vm924_vm9 = vcmp.lt.f32.partialorder %v923_v56, 0.0004427343 }
 0x426   :  { %v1606_v43 = vpop.eup %1605  ;;  %v838_v46 = vmax.f32 %v2153_v34, 0.0  ;;  %v870_v49 = vmin.f32 %v2153_v34, 1.0  ;;  %v1008_v9 = vsel %vm1001_vm6, %v995_v38, 0.0  ;;  %v956_v51 = vmax.f32 %v916_v41, -100.0 }
 0x427   :  { %1009 = vadd.xlane.f32.xlu0 %v1008_v9  ;;  %v850_v25 = vmul.f32 0.6931472, %v1606_v43  ;;  %v922_v6 = vmul.f32 %v921_v52, %v877_v54  ;;  %v1626_v43 = vld [vmem:[#allocation2 + $0x28] sm:$0xff] }
 0x428   :  { %1609 = vlog2.f32 %v838_v46  ;;  %v878_v55 = vsub.f32 0.0, %v870_v49  ;;  %v980_v10 = vmul.f32 %v972_v24, %v956_v51  ;;  %v830_v54 = vadd.f32 0.5, %v1626_v43 }
 0x429   :  { %v861_v19 = vmax.f32 %v850_v25, -100.0 }
 0x42a   :  { %v1608_v60 = vpop.eup %1607  ;;  %v926_v32 = vadd.f32 1.0, %v878_v55  ;;  %v929_v22 = vmul.f32 -0.5, %v878_v55  ;;  %v988_v4 = vadd.f32 %v980_v10, %v964_v36  ;;  %v932_v16 = vand.u32 2147483647, %v878_v55 }
 0x42b   :  { %v919_v7 = vmul.f32 0.6931472, %v1608_v60  ;;  %v965_v21 = vmul.f32 %v861_v19, %v829_v63  ;;  %v974_v52 = vsub.f32 1.0, %v830_v54  ;;  %v2170_v19 = vpop.permute.xlu2 %1264 }
 0x42c   :  { %1611 = vlog2.f32 %v926_v32  ;;  %v996_v17 = vsub.f32 0.0, %v988_v4  ;;  %v930_v42 = vadd.f32 1.0, %v929_v22  ;;  %vm933_vm10 = vcmp.lt.f32.partialorder %v932_v16, 0.0004427343  ;;  %v2166_v4 = vpop.xlane.xlu1 %1158 }
 0x42d   :  { %v925_v3 = vsel %vm924_vm9, %v922_v6, %v919_v7 }
 0x42e   :  { %v1610_v18 = vpop.eup %1609  ;;  %v957_v20 = vmax.f32 %v925_v3, -100.0  ;;  %v1011_v8 = vsel %vm1001_vm6, %v996_v17, 0.0  ;;  %v931_v49 = vmul.f32 %v930_v42, %v878_v55 }
 0x42f   :  { %v852_v23 = vmul.f32 0.6931472, %v1610_v18  ;;  %1012 = vadd.xlane.f32.xlu2 %v1011_v8 }
 0x430   :  { %v981_v38 = vmul.f32 %v973_v13, %v957_v20 }
 0x431   :  { %v862_v51 = vmax.f32 %v852_v23, -100.0 }
 0x432   :  { %v1612_v41 = vpop.eup %1611  ;;  %v989_v24 = vadd.f32 %v981_v38, %v965_v21 }
 0x433   :  { %v928_v46 = vmul.f32 0.6931472, %v1612_v41  ;;  %v966_v10 = vmul.f32 %v862_v51, %v830_v54  ;;  %v1156_v21 = vpop.xlane.xlu2 %1155 }
 0x434   :  { %v997_v9 = vsub.f32 0.0, %v989_v24  ;;  %v2175_v8 = vpop.xlane.xlu1 %1167 }
 0x435   :  { %v934_v25 = vsel %vm933_vm10, %v931_v49, %v928_v46  ;;  %v1627_v46 = vld [vmem:[#allocation2 + $0x30] sm:$0xff] }
 0x436   :  { %v1014_v56 = vsel %vm1001_vm6, %v997_v9, 0.0  ;;  %v958_v36 = vmax.f32 %v934_v25, -100.0  ;;  %v831_v49 = vadd.f32 0.5, %v1627_v46 }
 0x437   :  { %1015 = vadd.xlane.f32.xlu1 %v1014_v56 }
 0x438   :  { %v982_v60 = vmul.f32 %v974_v52, %v958_v36  ;;  %v975_v25 = vsub.f32 1.0, %v831_v49 }
 0x43a   :  { %v990_v32 = vadd.f32 %v982_v60, %v966_v10 }
 0x43c   :  { %v998_v62 = vsub.f32 0.0, %v990_v32  ;;  %v2179_v10 = vpop.xlane.xlu1 %1176  ;;  %v2181_v32 = vpop.xlane.xlu2 %1164 }
 0x43e   :  { %v1017_v63 = vsel %vm1001_vm6, %v998_v62, 0.0  ;;  %v1282_v62 = vsel %vm1001_vm6, %v2126_v59, %v2088_v27  ;;  %v1178_v59 = vmul.f32 0.5, %v1156_v21  ;;  %v1283_v21 = vsel %vm1001_vm6, %v2131_v2, %v2054_v50 }
 0x43f   :  { %1018 = vadd.xlane.f32.xlu2 %v1017_v63  ;;  %v1284_v50 = vsel %vm1001_vm6, %v2136_v44, %v2017_v1  ;;  %v1285_v1 = vsel %vm1001_vm6, %v2141_v61, %v2090_v29 }
 0x457   :  { %1270 = vrot.lane.b32.xlu2 %v2025_v11, %s1740_s30 }
 0x470   :  { %v820_v55 = vpop.f32.mrf.mxu1 }
 0x471   :  { %v2164_v22 = vadd.f32 %v2123_v33, %v820_v55 }
 0x473   :  { %v839_v7 = vmax.f32 %v2164_v22, 0.0  ;;  %v871_v6 = vmin.f32 %v2164_v22, 1.0 }
 0x475   :  { %1613 = vlog2.f32 %v839_v7  ;;  %v879_v13 = vsub.f32 0.0, %v871_v6 }
 0x477   :  { %v935_v17 = vadd.f32 1.0, %v879_v13  ;;  %v938_v3 = vmul.f32 -0.5, %v879_v13  ;;  %v941_v24 = vand.u32 2147483647, %v879_v13 }
 0x478   :  { %v822_v18 = vpop.f32.mrf.mxu1 }
 0x479   :  { %v2173_v20 = vadd.f32 %v2123_v33, %v822_v18  ;;  %1615 = vlog2.f32 %v935_v17  ;;  %v939_v38 = vadd.f32 1.0, %v938_v3  ;;  %vm942_vm11 = vcmp.lt.f32.partialorder %v941_v24, 0.0004427343  ;;  %v1628_v18 = vld [vmem:[#allocation2 + $0x38] sm:$0xff] }
 0x47b   :  { %v1614_v11 = vpop.eup %1613  ;;  %v840_v42 = vmax.f32 %v2173_v20, 0.0  ;;  %v872_v23 = vmin.f32 %v2173_v20, 1.0  ;;  %v940_v51 = vmul.f32 %v939_v38, %v879_v13 }
 0x47c   :  { %v854_v16 = vmul.f32 0.6931472, %v1614_v11  ;;  %v832_v11 = vadd.f32 0.5, %v1628_v18 }
 0x47d   :  { %1617 = vlog2.f32 %v840_v42  ;;  %v880_v41 = vsub.f32 0.0, %v872_v23  ;;  %v1290_v42 = vsel %vm111_vm1, %v1282_v62, %v2098_v39  ;;  %v1174_v39 = vpop.xlane.xlu2 %1173 }
 0x47e   :  { %v863_v52 = vmax.f32 %v854_v16, -100.0  ;;  %v1162_v16 = vpop.xlane.xlu0 %1161  ;;  %v976_v27 = vsub.f32 1.0, %v832_v11  ;;  %v1299_v46 = vsel %vm1298_vm12, %v1290_v42, %v2092_v30 }
 0x47f   :  { %v1616_v43 = vpop.eup %1615  ;;  %v944_v54 = vadd.f32 1.0, %v880_v41  ;;  %v947_v33 = vmul.f32 -0.5, %v880_v41  ;;  %v950_v13 = vand.u32 2147483647, %v880_v41 }
 0x480   :  { %v937_v9 = vmul.f32 0.6931472, %v1616_v43  ;;  %v967_v7 = vmul.f32 %v863_v52, %v831_v49 }
 0x481   :  { %1619 = vlog2.f32 %v944_v54  ;;  %v948_v63 = vadd.f32 1.0, %v947_v33  ;;  %vm951_vm14 = vcmp.lt.f32.partialorder %v950_v13, 0.0004427343 }
 0x482   :  { %v943_v56 = vsel %vm942_vm11, %v940_v51, %v937_v9 }
 0x483   :  { %v1618_v36 = vpop.eup %1617  ;;  %v959_v60 = vmax.f32 %v943_v56, -100.0  ;;  %v949_v38 = vmul.f32 %v948_v63, %v880_v41 }
 0x484   :  { %v856_v55 = vmul.f32 0.6931472, %v1618_v36  ;;  %v1291_v36 = vsel %vm111_vm1, %v1283_v21, %v2027_v12 }
 0x485   :  { %v983_v6 = vmul.f32 %v975_v25, %v959_v60 }
 0x486   :  { %v864_v43 = vmax.f32 %v856_v55, -100.0  ;;  %v2199_v62 = vpop.xlane.xlu0 %1170  ;;  %v1179_v55 = vmul.f32 0.5, %v2166_v4  ;;  %v1180_v4 = vmul.f32 0.5, %v1162_v16 }
 0x487   :  { %v1620_v17 = vpop.eup %1619  ;;  %v991_v3 = vadd.f32 %v983_v6, %v967_v7  ;;  %v1300_v6 = vsel %vm1298_vm12, %v1291_v36, %v2106_v58 }
 0x488   :  { %v946_v23 = vmul.f32 0.6931472, %v1620_v17  ;;  %v968_v52 = vmul.f32 %v864_v43, %v832_v11  ;;  %v1292_v17 = vsel %vm111_vm1, %v1284_v50, %v2081_v47  ;;  %v1293_v47 = vsel %vm111_vm1, %v1285_v1, %v2100_v40 }
 0x489   :  { %v999_v24 = vsub.f32 0.0, %v991_v3  ;;  %v1301_v3 = vsel %vm1298_vm12, %v1292_v17, %v2111_v57  ;;  %v1181_v57 = vmul.f32 0.5, %v2181_v32  ;;  %v1182_v40 = vmul.f32 0.5, %v2175_v8 }
 0x48a   :  { %v952_v54 = vsel %vm951_vm14, %v949_v38, %v946_v23  ;;  %v1004_v49 = vpop.xlane.xlu1 %1003  ;;  %v1302_v23 = vsel %vm1298_vm12, %v1293_v47, %v2170_v19  ;;  %v1286_v38 = vsel %vm1001_vm6, %v2147_v53, %v2070_v28 }
 0x48b   :  { %v1020_v33 = vsel %vm1001_vm6, %v999_v24, 0.0  ;;  %v960_v9 = vmax.f32 %v952_v54, -100.0  ;;  %v1308_v51 = vsel %vm1307_vm13, %v1299_v46, %v1004_v49 }
 0x48c   :  { %1021 = vadd.xlane.f32.xlu0 %v1020_v33  ;;  %v1317_v41 = vsel %vm1316_vm15, %v1308_v51, %v1178_v59  ;;  %v1289_v33 = vsel %vm1001_vm6, %v2173_v20, %v2075_v15  ;;  %v1287_v15 = vsel %vm1001_vm6, %v2153_v34, %v2095_v35 }
 0x48d   :  { %v984_v25 = vmul.f32 %v976_v27, %v960_v9  ;;  %v1326_v56 = vsel %vm1325_vm2, %v1317_v41, 0.0  ;;  %v1184_v27 = vmul.f32 0.5, %v1174_v39 }
 0x48e   :  { %1334 = vst [vmem:[#allocation8] sm:$0xff] %v1326_v56 }
 0x48f   :  { %v992_v30 = vadd.f32 %v984_v25, %v968_v52 }
 0x491   :  { %v1000_v60 = vsub.f32 0.0, %v992_v30 }
 0x492   :  { %v1007_v7 = vpop.xlane.xlu2 %1006 }
 0x493   :  { %v1023_v63 = vsel %vm1001_vm6, %v1000_v60, 0.0  ;;  %v1309_v2 = vsel %vm1307_vm13, %v1300_v6, %v1007_v7 }
 0x494   :  { %1024 = vadd.xlane.f32.xlu1 %v1023_v63  ;;  %v1318_v12 = vsel %vm1316_vm15, %v1309_v2, %v1179_v55 }
 0x495   :  { %v1327_v13 = vsel %vm1325_vm2, %v1318_v12, 0.0 }
 0x496   :  { %1335 = vst [vmem:[#allocation8 + $0x8] sm:$0xff] %v1327_v13 }
 0x49a   :  { %v1010_v58 = vpop.xlane.xlu0 %1009 }
 0x49b   :  { %v1310_v18 = vsel %vm1307_vm13, %v1301_v3, %v1010_v58 }
 0x49c   :  { %v1319_v11 = vsel %vm1316_vm15, %v1310_v18, %v1180_v4 }
 0x49d   :  { %v1328_v44 = vsel %vm1325_vm2, %v1319_v11, 0.0 }
 0x49e   :  { %1336 = vst [vmem:[#allocation8 + $0x10] sm:$0xff] %v1328_v44 }
 0x4a0   :  { %1272 = vrot.lane.b32.xlu0 %v2030_v14, %s1740_s30  ;;  %v1294_v14 = vsel %vm111_vm1, %v1286_v38, %v2040_v37  ;;  %v1288_v37 = vsel %vm1001_vm6, %v2164_v22, %v2020_v5  ;;  %v1297_v5 = vsel %vm111_vm1, %v1289_v33, %v2048_v45  ;;  %v1295_v45 = vsel %vm111_vm1, %v1287_v15, %v2085_v26 }
 0x4a1   :  { %v1303_v32 = vsel %vm1298_vm12, %v1294_v14, %v2115_v0  ;;  %v1296_v0 = vsel %vm111_vm1, %v1288_v37, %v2102_v48  ;;  %v1185_v48 = vmul.f32 0.5, %v2179_v10  ;;  %v1183_v10 = vmul.f32 0.5, %v2199_v62 }
 0x4a2   :  { %v1013_v42 = vpop.xlane.xlu2 %1012 }
 0x4a3   :  { %v1311_v29 = vsel %vm1307_vm13, %v1302_v23, %v1013_v42 }
 0x4a4   :  { %v1320_v61 = vsel %vm1316_vm15, %v1311_v29, %v1181_v57 }
 0x4a5   :  { %v1329_v16 = vsel %vm1325_vm2, %v1320_v61, 0.0 }
 0x4a6   :  { %1337 = vst [vmem:[#allocation8 + $0x18] sm:$0xff] %v1329_v16 }
 0x4aa   :  { %v1016_v19 = vpop.xlane.xlu1 %1015 }
 0x4ab   :  { %v1312_v24 = vsel %vm1307_vm13, %v1303_v32, %v1016_v19 }
 0x4ac   :  { %v1321_v28 = vsel %vm1316_vm15, %v1312_v24, %v1182_v40 }
 0x4ad   :  { %1268 = vrot.lane.b32.xlu1 %v1988_v31, %s1740_s30  ;;  %v1330_v53 = vsel %vm1325_vm2, %v1321_v28, 0.0 }
 0x4ae   :  { %1338 = vst [vmem:[#allocation8 + $0x20] sm:$0xff] %v1330_v53 }
 0x4b2   :  { %v1019_v43 = vpop.xlane.xlu2 %1018 }
 0x4ba   :  { %v1271_v8 = vpop.permute.xlu2 %1270 }
 0x4bb   :  { %v1305_v59 = vsel %vm1298_vm12, %v1296_v0, %v1271_v8 }
 0x4ff   :  { %v1022_v54 = vpop.xlane.xlu0 %1021 }
 0x500   :  { %v1314_v46 = vsel %vm1307_vm13, %v1305_v59, %v1022_v54 }
 0x501   :  { %v1323_v31 = vsel %vm1316_vm15, %v1314_v46, %v1184_v27 }
 0x502   :  { %v1332_v49 = vsel %vm1325_vm2, %v1323_v31, 0.0 }
 0x503   :  { %1340 = vst [vmem:[#allocation8 + $0x30] sm:$0xff] %v1332_v49 }
 0x507   :  { %v1025_v9 = vpop.xlane.xlu1 %1024 }
 0x512   :  { %v1273_v22 = vpop.permute.xlu0 %1272 }
 0x513   :  { %v1306_v39 = vsel %vm1298_vm12, %v1297_v5, %v1273_v22 }
 0x514   :  { %v1315_v51 = vsel %vm1307_vm13, %v1306_v39, %v1025_v9 }
 0x515   :  { %v1324_v41 = vsel %vm1316_vm15, %v1315_v51, %v1185_v48 }
 0x516   :  { %v1333_v52 = vsel %vm1325_vm2, %v1324_v41, 0.0 }
 0x517   :  { %1341 = vst [vmem:[#allocation8 + $0x38] sm:$0xff] %v1333_v52 }
 0x51f   :  { %v1269_v20 = vpop.permute.xlu1 %1268 }
 0x520   :  { %v1304_v25 = vsel %vm1298_vm12, %v1295_v45, %v1269_v20 }
 0x521   :  { %v1313_v21 = vsel %vm1307_vm13, %v1304_v25, %v1019_v43 }
 0x522   :  { %v1322_v56 = vsel %vm1316_vm15, %v1313_v21, %v1183_v10 }
 0x523   :  { %v1331_v35 = vsel %vm1325_vm2, %v1322_v56, 0.0 }
 0x524   :  { %1339 = vst [vmem:[#allocation8 + $0x28] sm:$0xff] %v1331_v35 }
 0x525   :  { %1354 = dma.vmem_to_hbm [thread:$0]  %s1347_s5, 1024, %s1349_s8, [#allocation4], %s1735_s24, %s1735_s24, %s1736_s1  }
 0x526   :  { %1729 = dma.done.wait [#allocation4], 1024  }
 0x527   :  { %1730 = vsyncadd [#allocation4], 4294966272 }
 0x528   :  { %1359 = vsyncpa [#allocation3], 1 }
 0x529   :  { %1360 = vsyncpa [#allocation6], 1 }
 0x52a   :  { %1361 = vsyncpa [#allocation4], 1 }

</bundles_post_ra>
